<compile_context>
chip_gen: v5e
topology: v5e:2x2
jax: 0.10.0
libtpu: 0.0.40
codegen_flags: <defaults>
</compile_context>

<pallas_src>
import jax
import jax.numpy as jnp
from jax import lax
from jax.experimental import pallas as pl
from jax.experimental.pallas import tpu as pltpu

BN_EPS = 1e-5
LANE = 128


def _round_up(x, m):
    return ((x + m - 1) // m) * m


# ----------------------------------------------------------------------------
# Generic fused "tap conv" kernel:
#   out = [ReLU]( (sum_k slab_k @ W_k) * bn_scale + bn_bias [+ residual] )
#   res = slab_proj @ Wd * bnd_scale + bnd_bias          (optional 2nd output)
# ----------------------------------------------------------------------------
def _make_tap_conv_kernel(n_src, taps, th, wo, relu, proj_tap, has_res):
    tm = th * wo

    def kernel(*refs):
        pos = 0
        src_refs = refs[pos:pos + n_src]; pos += n_src
        w_ref, s_ref, b_ref = refs[pos:pos + 3]; pos += 3
        if proj_tap is not None:
            wd_ref, sd_ref, bd_ref = refs[pos:pos + 3]; pos += 3
        if has_res:
            r_ref = refs[pos]; pos += 1
        out_ref = refs[pos]; pos += 1
        if proj_tap is not None:
            res_ref = refs[pos]; pos += 1

        t = pl.program_id(1)
        row0 = pl.multiple_of(t * th, th)

        def load_slab(src_idx, r_off, c_off):
            sl = src_refs[src_idx][pl.ds(row0 + r_off, th), pl.ds(c_off, wo), :]
            return sl.reshape(tm, sl.shape[-1])          # (TM, Cin_p), bf16

        acc = jnp.zeros((tm, out_ref.shape[-1]), jnp.float32)
        for k, (si, ro, co) in enumerate(taps):
            acc = acc + jnp.dot(load_slab(si, ro, co), w_ref[k],
                                preferred_element_type=jnp.float32)

        y = acc * s_ref[...] + b_ref[...]                # f32 BN epilogue
        if has_res:
            y = y + r_ref[...].astype(jnp.float32)
        if relu:
            y = jnp.maximum(y, 0.0)
        out_ref[...] = y.astype(out_ref.dtype)

        if proj_tap is not None:                          # fused 1x1 shortcut
            si, ro, co = proj_tap
            p = jnp.dot(load_slab(si, ro, co), wd_ref[...],
                        preferred_element_type=jnp.float32)
            p = p * sd_ref[...] + bd_ref[...]
            res_ref[...] = p.astype(res_ref.dtype)

    return kernel


def _pick_tile_rows(ho, wo, target_rows=512):
    """Largest divisor of `ho` whose row-tile has <= target_rows output pixels."""
    th = max(1, min(ho, target_rows // max(wo, 1)))
    while ho % th:
        th -= 1
    if th == ho and ho > 1:
        # prefer >= 2 row tiles so the software pipeline has something to overlap
        for cand in range(ho // 2, 0, -1):
            if ho % cand == 0:
                th = cand
                break
    return th


def _fused_conv(srcs, taps, w_taps, scale, bias, *, n, ho, wo, cout_p, relu,
                proj=None, residual=None, out_dtype=jnp.bfloat16,
                res_dtype=jnp.float32):
    m = ho * wo
    th = _pick_tile_rows(ho, wo)
    tm = th * wo
    grid = (n, ho // th)
    ntaps, cin_p, _ = w_taps.shape

    in_specs = []
    operands = []
    for s in srcs:                                     # whole padded image per batch
        _, hs, ws, cs = s.shape
        in_specs.append(pl.BlockSpec((None, hs, ws, cs), lambda b, t: (b, 0, 0, 0)))
        operands.append(s)
    in_specs.append(pl.BlockSpec((ntaps, cin_p, cout_p), lambda b, t: (0, 0, 0)))
    operands.append(w_taps)
    in_specs.append(pl.BlockSpec((1, cout_p), lambda b, t: (0, 0)))
    operands.append(scale)
    in_specs.append(pl.BlockSpec((1, cout_p), lambda b, t: (0, 0)))
    operands.append(bias)

    proj_tap = None
    if proj is not None:
        proj_tap, wd, sd, bd = proj
        in_specs += [pl.BlockSpec((cin_p, cout_p), lambda b, t: (0, 0)),
                     pl.BlockSpec((1, cout_p), lambda b, t: (0, 0)),
                     pl.BlockSpec((1, cout_p), lambda b, t: (0, 0))]
        operands += [wd, sd, bd]
    if residual is not None:
        in_specs.append(pl.BlockSpec((None, tm, cout_p), lambda b, t: (b, t, 0)))
        operands.append(residual)

    out_spec = pl.BlockSpec((None, tm, cout_p), lambda b, t: (b, t, 0))
    out_sds = jax.ShapeDtypeStruct((n, m, cout_p), out_dtype)
    multi = proj is not None
    if multi:
        out_specs_arg = (out_spec, pl.BlockSpec((None, tm, cout_p),
                                                lambda b, t: (b, t, 0)))
        out_shape_arg = (out_sds, jax.ShapeDtypeStruct((n, m, cout_p), res_dtype))
    else:
        out_specs_arg = out_spec
        out_shape_arg = out_sds

    kernel = _make_tap_conv_kernel(len(srcs), taps, th, wo, relu, proj_tap,
                                   residual is not None)
    out = pl.pallas_call(
        kernel,
        grid=grid,
        in_specs=in_specs,
        out_specs=out_specs_arg,
        out_shape=out_shape_arg,
        compiler_params=pltpu.CompilerParams(
            dimension_semantics=("parallel", "parallel")),
    )(*operands)
    return tuple(out) if multi else (out,)


# ----------------------------------------------------------------------------
# Host-side glue: spatial padding, phase decomposition, weight/BN packing
# ----------------------------------------------------------------------------
def _prep_conv1_sources(x_p, stride):
    """Padded (and, for stride 2, phase-decomposed) input views + tap plan."""
    n, h, w, _ = x_p.shape
    xp = jnp.pad(x_p, ((0, 0), (1, 1), (1, 1), (0, 0)))
    ho = (h + 2 - 3) // stride + 1
    wo = (w + 2 - 3) // stride + 1
    if stride == 1:
        srcs = [xp]
        taps = [(0, dy, dx) for dy in range(3) for dx in range(3)]
        proj_tap = (0, 1, 1)                 # 1x1 stride-1 shortcut: x[i,j] = xp[i+1,j+1]
    else:                                    # stride 2: 4 phases, contiguous taps
        srcs = []
        for py in range(2):
            for px in range(2):
                ph = xp[:, py::2, px::2, :][:, :ho + 1, :wo + 1, :]
                pr = ho + 1 - ph.shape[1]
                pc = wo + 1 - ph.shape[2]
                if pr or pc:
                    ph = jnp.pad(ph, ((0, 0), (0, pr), (0, pc), (0, 0)))
                srcs.append(ph)
        taps = [(2 * (dy % 2) + (dx % 2), dy // 2, dx // 2)
                for dy in range(3) for dx in range(3)]
        proj_tap = (3, 0, 0)                 # 1x1 stride-2 shortcut = phase (1,1)
    return srcs, taps, proj_tap, ho, wo


def _pack_w3x3(w_hwio, cin_p, cout_p):
    kh, kw, cin, cout = w_hwio.shape
    w = jnp.pad(w_hwio, ((0, 0), (0, 0), (0, cin_p - cin), (0, cout_p - cout)))
    return w.reshape(kh * kw, cin_p, cout_p).astype(jnp.bfloat16)


def _pack_w1x1(w_hwio, cin_p, cout_p):
    _, _, cin, cout = w_hwio.shape
    w = jnp.pad(w_hwio, ((0, 0), (0, 0), (0, cin_p - cin), (0, cout_p - cout)))
    return w.reshape(cin_p, cout_p).astype(jnp.bfloat16)


def _fold_bn(bn, cout_p):
    gamma, beta, mean, var = bn
    scale = gamma / jnp.sqrt(var + BN_EPS)
    bias = beta - mean * scale
    pad = cout_p - scale.shape[0]
    scale = jnp.pad(scale, (0, pad)).reshape(1, cout_p).astype(jnp.float32)
    bias = jnp.pad(bias, (0, pad)).reshape(1, cout_p).astype(jnp.float32)
    return scale, bias


# ----------------------------------------------------------------------------
# BasicBlock forward (NCHW in / NCHW out, mirroring the PyTorch module)
# ----------------------------------------------------------------------------
def basic_block_forward(x_nchw, params):
    x = jnp.transpose(x_nchw, (0, 2, 3, 1)).astype(jnp.float32)   # NCHW -> NHWC
    n, h, w, c_in = x.shape
    stride = params["stride"]
    c_out = params["w1"].shape[-1]
    cin_p = _round_up(c_in, LANE)
    cout_p = _round_up(c_out, LANE)

    # lane-dense, bf16 activations
    x_p = jnp.pad(x, ((0, 0), (0, 0), (0, 0), (0, cin_p - c_in))).astype(jnp.bfloat16)

    # ---- conv1 + bn1 + ReLU (+ fused 1x1 projection shortcut + bnd) ----
    srcs, taps, proj_tap, ho, wo = _prep_conv1_sources(x_p, stride)
    w1 = _pack_w3x3(params["w1"], cin_p, cout_p)
    s1, b1 = _fold_bn(params["bn1"], cout_p)

    proj = None
    if "wd" in params:
        wd = _pack_w1x1(params["wd"], cin_p, cout_p)
        sd, bd = _fold_bn(params["bnd"], cout_p)
        proj = (proj_tap, wd, sd, bd)

    outs = _fused_conv(srcs, taps, w1, s1, b1, n=n, ho=ho, wo=wo, cout_p=cout_p,
                       relu=True, proj=proj, residual=None,
                       out_dtype=jnp.bfloat16, res_dtype=jnp.float32)
    out1 = outs[0]                                  # (N, Ho*Wo, Cout_p) bf16
    if proj is not None:
        res = outs[1]                               # projected shortcut, f32
    else:
        res = x_p.reshape(n, h * w, cin_p)          # identity shortcut (c_in == c_out)

    # ---- conv2 + bn2 + residual add + final ReLU ----
    out1_nhwc = out1.reshape(n, ho, wo, cout_p)
    xp2 = jnp.pad(out1_nhwc, ((0, 0), (1, 1), (1, 1), (0, 0)))
    taps2 = [(0, dy, dx) for dy in range(3) for dx in range(3)]
    w2 = _pack_w3x3(params["w2"], cout_p, cout_p)
    s2, b2 = _fold_bn(params["bn2"], cout_p)

    y = _fused_conv([xp2], taps2, w2, s2, b2, n=n, ho=ho, wo=wo, cout_p=cout_p,
                    relu=True, proj=None, residual=res,
                    out_dtype=jnp.float32)[0]       # (N, Ho*Wo, Cout_p) f32

    y = y.reshape(n, ho, wo, cout_p)[..., :c_out]
    return jnp.transpose(y, (0, 3, 1, 2))           # NHWC -> NCHW


# ----------------------------------------------------------------------------
# Pure-JAX reference (lax.conv, f32) for correctness checking
# ----------------------------------------------------------------------------
def _ref_block(x_nchw, params):
    x = jnp.transpose(x_nchw, (0, 2, 3, 1))

    def conv(inp, w, stride, pad):
        return lax.conv_general_dilated(
            inp, w, (stride, stride), [(pad, pad), (pad, pad)],
            dimension_numbers=("NHWC", "HWIO", "NHWC"),
            precision=lax.Precision.HIGHEST)

    def bn(inp, bnp):
        g, b, m, v = bnp
        return (inp - m) / jnp.sqrt(v + BN_EPS) * g + b

    o = jax.nn.relu(bn(conv(x, params["w1"], params["stride"], 1), params["bn1"]))
    o = bn(conv(o, params["w2"], 1, 1), params["bn2"])
    if "wd" in params:
        r = bn(conv(x, params["wd"], params["stride"], 0), params["bnd"])
    else:
        r = x
    return jnp.transpose(jax.nn.relu(r + o), (0, 3, 1, 2))


# ----------------------------------------------------------------------------
# Deterministic parameter construction
# ----------------------------------------------------------------------------
def make_params(key, c_in, c_out, is_downsample):
    ks = jax.random.split(key, 12)

    def bn_params(k, c):
        k0, k1, k2, k3 = jax.random.split(k, 4)
        gamma = jax.random.uniform(k0, (c,), jnp.float32, 0.5, 1.5)
        beta = jax.random.normal(k1, (c,), jnp.float32) * 0.1
        mean = jax.random.normal(k2, (c,), jnp.float32) * 0.1
        var = jax.random.uniform(k3, (c,), jnp.float32, 0.5, 1.5)
        return (gamma, beta, mean, var)

    p = {
        "stride": 2 if is_downsample else 1,
        "w1": jax.random.normal(ks[0], (3, 3, c_in, c_out), jnp.float32) * 0.1,
        "bn1": bn_params(ks[1], c_out),
        "w2": jax.random.normal(ks[2], (3, 3, c_out, c_out), jnp.float32) * 0.1,
        "bn2": bn_params(ks[3], c_out),
    }
    if is_downsample or c_in != c_out:
        p["wd"] = jax.random.normal(ks[4], (1, 1, c_in, c_out), jnp.float32) * 0.1
        p["bnd"] = bn_params(ks[5], c_out)
    return p


if __name__ == "__main__":
    key = jax.random.PRNGKey(0)
    k_x, k_p1, k_p2, k_p3 = jax.random.split(key, 4)
    x = jax.random.normal(k_x, (2, 4, 16, 16), jnp.float32)       # NCHW

    # Tolerance accounts for bf16 MXU inputs (f32 accumulation + f32 epilogue).
    RTOL = ATOL = 2e-2

    # case 1: downsampling block (stride-2 conv1 + fused 1x1 stride-2 projection)
    params_ds = make_params(k_p1, c_in=4, c_out=8, is_downsample=True)
    y_ds = jax.block_until_ready(basic_block_forward(x, params_ds))
    ref_ds = _ref_block(x, params_ds)
    assert y_ds.shape == (2, 8, 8, 8)
    assert jnp.allclose(y_ds, ref_ds, rtol=RTOL, atol=ATOL), \
        float(jnp.max(jnp.abs(y_ds - ref_ds)))

    # case 2: identity-shortcut block (c_in == c_out, stride 1)
    params_id = make_params(k_p2, c_in=4, c_out=4, is_downsample=False)
    y_id = jax.block_until_ready(basic_block_forward(x, params_id))
    ref_id = _ref_block(x, params_id)
    assert y_id.shape == (2, 4, 16, 16)
    assert jnp.allclose(y_id, ref_id, rtol=RTOL, atol=ATOL), \
        float(jnp.max(jnp.abs(y_id - ref_id)))

    # case 3: channel-expanding block (c_in != c_out, stride-1 fused projection)
    params_ex = make_params(k_p3, c_in=4, c_out=8, is_downsample=False)
    y_ex = jax.block_until_ready(basic_block_forward(x, params_ex))
    ref_ex = _ref_block(x, params_ex)
    assert y_ex.shape == (2, 8, 16, 16)
    assert jnp.allclose(y_ex, ref_ex, rtol=RTOL, atol=ATOL), \
        float(jnp.max(jnp.abs(y_ex - ref_ex)))

    print("KERNEL_OK")
</pallas_src>

<mosaic_0001>
module attributes {stable_mosaic.version = 11 : i64} {
  func.func @kernel(%arg0: i32, %arg1: i32, %arg2: memref<1x9x9x128xbf16, #tpu.memory_space<vmem>>, %arg3: memref<1x9x9x128xbf16, #tpu.memory_space<vmem>>, %arg4: memref<1x9x9x128xbf16, #tpu.memory_space<vmem>>, %arg5: memref<1x9x9x128xbf16, #tpu.memory_space<vmem>>, %arg6: memref<9x128x128xbf16, #tpu.memory_space<vmem>>, %arg7: memref<1x128xf32, #tpu.memory_space<vmem>>, %arg8: memref<1x128xf32, #tpu.memory_space<vmem>>, %arg9: memref<128x128xbf16, #tpu.memory_space<vmem>>, %arg10: memref<1x128xf32, #tpu.memory_space<vmem>>, %arg11: memref<1x128xf32, #tpu.memory_space<vmem>>, %arg12: memref<1x32x128xbf16, #tpu.memory_space<vmem>>, %arg13: memref<1x32x128xf32, #tpu.memory_space<vmem>>) attributes {dimension_semantics = [#tpu.dimension_semantics<parallel>, #tpu.dimension_semantics<parallel>], iteration_bounds = array<i64: 2, 2>, scalar_prefetch = 0 : i64, scratch_operands = 0 : i64, tpu.core_type = #tpu.core_type<tc>, window_params = [{transform_indices = @transform_0, window_bounds = array<i64: 1, 9, 9, 128>}, {transform_indices = @transform_1, window_bounds = array<i64: 1, 9, 9, 128>}, {transform_indices = @transform_2, window_bounds = array<i64: 1, 9, 9, 128>}, {transform_indices = @transform_3, window_bounds = array<i64: 1, 9, 9, 128>}, {pipeline_mode = #tpu.pipeline_mode<synchronous>, transform_indices = @transform_4, window_bounds = array<i64: 9, 128, 128>}, {pipeline_mode = #tpu.pipeline_mode<synchronous>, transform_indices = @transform_5, window_bounds = array<i64: 1, 128>}, {pipeline_mode = #tpu.pipeline_mode<synchronous>, transform_indices = @transform_6, window_bounds = array<i64: 1, 128>}, {pipeline_mode = #tpu.pipeline_mode<synchronous>, transform_indices = @transform_7, window_bounds = array<i64: 128, 128>}, {pipeline_mode = #tpu.pipeline_mode<synchronous>, transform_indices = @transform_8, window_bounds = array<i64: 1, 128>}, {pipeline_mode = #tpu.pipeline_mode<synchronous>, transform_indices = @transform_9, window_bounds = array<i64: 1, 128>}, {transform_indices = @transform_10, window_bounds = array<i64: 1, 32, 128>}, {transform_indices = @transform_11, window_bounds = array<i64: 1, 32, 128>}]} {
    %c4_i32 = arith.constant 4 : i32
    %0 = arith.muli %arg1, %c4_i32 : i32
    %1 = tpu.assume_multiple %0, 4 : i32
    %cst = arith.constant 0.000000e+00 : f32
    %2 = vector.broadcast %cst : f32 to vector<32x128xf32>
    %c0_i32 = arith.constant 0 : i32
    %3 = arith.addi %1, %c0_i32 : i32
    %c0 = arith.constant 0 : index
    %4 = arith.index_cast %3 : i32 to index
    %c0_0 = arith.constant 0 : index
    %c0_1 = arith.constant 0 : index
    %5 = vector.load %arg2[%c0, %4, %c0_0, %c0_1] : memref<1x9x9x128xbf16, #tpu.memory_space<vmem>>, vector<1x4x8x128xbf16>
    %6 = vector.shape_cast %5 : vector<1x4x8x128xbf16> to vector<4x8x128xbf16>
    %7 = vector.shape_cast %6 : vector<4x8x128xbf16> to vector<32x128xbf16>
    %c0_2 = arith.constant 0 : index
    %c0_3 = arith.constant 0 : index
    %c0_4 = arith.constant 0 : index
    %8 = vector.load %arg6[%c0_2, %c0_3, %c0_4] : memref<9x128x128xbf16, #tpu.memory_space<vmem>>, vector<1x128x128xbf16>
    %9 = vector.shape_cast %8 : vector<1x128x128xbf16> to vector<128x128xbf16>
    %cst_5 = arith.constant dense<0.000000e+00> : vector<32x128xf32>
    %10 = tpu.matmul %7, %9, %cst_5 {dimension_numbers = #tpu.dot_dimension_numbers<[1], [0], [0], [1], [0, 0, 1, 1], [], []>} : vector<32x128xbf16>, vector<128x128xbf16>, vector<32x128xf32> -> vector<32x128xf32>
    %11 = arith.addf %2, %10 : vector<32x128xf32>
    %c0_i32_6 = arith.constant 0 : i32
    %12 = arith.addi %1, %c0_i32_6 : i32
    %c0_7 = arith.constant 0 : index
    %13 = arith.index_cast %12 : i32 to index
    %c0_8 = arith.constant 0 : index
    %c0_9 = arith.constant 0 : index
    %14 = vector.load %arg3[%c0_7, %13, %c0_8, %c0_9] : memref<1x9x9x128xbf16, #tpu.memory_space<vmem>>, vector<1x4x8x128xbf16>
    %15 = vector.shape_cast %14 : vector<1x4x8x128xbf16> to vector<4x8x128xbf16>
    %16 = vector.shape_cast %15 : vector<4x8x128xbf16> to vector<32x128xbf16>
    %c1 = arith.constant 1 : index
    %c0_10 = arith.constant 0 : index
    %c0_11 = arith.constant 0 : index
    %17 = vector.load %arg6[%c1, %c0_10, %c0_11] : memref<9x128x128xbf16, #tpu.memory_space<vmem>>, vector<1x128x128xbf16>
    %18 = vector.shape_cast %17 : vector<1x128x128xbf16> to vector<128x128xbf16>
    %cst_12 = arith.constant dense<0.000000e+00> : vector<32x128xf32>
    %19 = tpu.matmul %16, %18, %cst_12 {dimension_numbers = #tpu.dot_dimension_numbers<[1], [0], [0], [1], [0, 0, 1, 1], [], []>} : vector<32x128xbf16>, vector<128x128xbf16>, vector<32x128xf32> -> vector<32x128xf32>
    %20 = arith.addf %11, %19 : vector<32x128xf32>
    %c0_i32_13 = arith.constant 0 : i32
    %21 = arith.addi %1, %c0_i32_13 : i32
    %c0_14 = arith.constant 0 : index
    %22 = arith.index_cast %21 : i32 to index
    %c1_15 = arith.constant 1 : index
    %c0_16 = arith.constant 0 : index
    %23 = vector.load %arg2[%c0_14, %22, %c1_15, %c0_16] : memref<1x9x9x128xbf16, #tpu.memory_space<vmem>>, vector<1x4x8x128xbf16>
    %24 = vector.shape_cast %23 : vector<1x4x8x128xbf16> to vector<4x8x128xbf16>
    %25 = vector.shape_cast %24 : vector<4x8x128xbf16> to vector<32x128xbf16>
    %c2 = arith.constant 2 : index
    %c0_17 = arith.constant 0 : index
    %c0_18 = arith.constant 0 : index
    %26 = vector.load %arg6[%c2, %c0_17, %c0_18] : memref<9x128x128xbf16, #tpu.memory_space<vmem>>, vector<1x128x128xbf16>
    %27 = vector.shape_cast %26 : vector<1x128x128xbf16> to vector<128x128xbf16>
    %cst_19 = arith.constant dense<0.000000e+00> : vector<32x128xf32>
    %28 = tpu.matmul %25, %27, %cst_19 {dimension_numbers = #tpu.dot_dimension_numbers<[1], [0], [0], [1], [0, 0, 1, 1], [], []>} : vector<32x128xbf16>, vector<128x128xbf16>, vector<32x128xf32> -> vector<32x128xf32>
    %29 = arith.addf %20, %28 : vector<32x128xf32>
    %c0_i32_20 = arith.constant 0 : i32
    %30 = arith.addi %1, %c0_i32_20 : i32
    %c0_21 = arith.constant 0 : index
    %31 = arith.index_cast %30 : i32 to index
    %c0_22 = arith.constant 0 : index
    %c0_23 = arith.constant 0 : index
    %32 = vector.load %arg4[%c0_21, %31, %c0_22, %c0_23] : memref<1x9x9x128xbf16, #tpu.memory_space<vmem>>, vector<1x4x8x128xbf16>
    %33 = vector.shape_cast %32 : vector<1x4x8x128xbf16> to vector<4x8x128xbf16>
    %34 = vector.shape_cast %33 : vector<4x8x128xbf16> to vector<32x128xbf16>
    %c3 = arith.constant 3 : index
    %c0_24 = arith.constant 0 : index
    %c0_25 = arith.constant 0 : index
    %35 = vector.load %arg6[%c3, %c0_24, %c0_25] : memref<9x128x128xbf16, #tpu.memory_space<vmem>>, vector<1x128x128xbf16>
    %36 = vector.shape_cast %35 : vector<1x128x128xbf16> to vector<128x128xbf16>
    %cst_26 = arith.constant dense<0.000000e+00> : vector<32x128xf32>
    %37 = tpu.matmul %34, %36, %cst_26 {dimension_numbers = #tpu.dot_dimension_numbers<[1], [0], [0], [1], [0, 0, 1, 1], [], []>} : vector<32x128xbf16>, vector<128x128xbf16>, vector<32x128xf32> -> vector<32x128xf32>
    %38 = arith.addf %29, %37 : vector<32x128xf32>
    %c0_i32_27 = arith.constant 0 : i32
    %39 = arith.addi %1, %c0_i32_27 : i32
    %c0_28 = arith.constant 0 : index
    %40 = arith.index_cast %39 : i32 to index
    %c0_29 = arith.constant 0 : index
    %c0_30 = arith.constant 0 : index
    %41 = vector.load %arg5[%c0_28, %40, %c0_29, %c0_30] : memref<1x9x9x128xbf16, #tpu.memory_space<vmem>>, vector<1x4x8x128xbf16>
    %42 = vector.shape_cast %41 : vector<1x4x8x128xbf16> to vector<4x8x128xbf16>
    %43 = vector.shape_cast %42 : vector<4x8x128xbf16> to vector<32x128xbf16>
    %c4 = arith.constant 4 : index
    %c0_31 = arith.constant 0 : index
    %c0_32 = arith.constant 0 : index
    %44 = vector.load %arg6[%c4, %c0_31, %c0_32] : memref<9x128x128xbf16, #tpu.memory_space<vmem>>, vector<1x128x128xbf16>
    %45 = vector.shape_cast %44 : vector<1x128x128xbf16> to vector<128x128xbf16>
    %cst_33 = arith.constant dense<0.000000e+00> : vector<32x128xf32>
    %46 = tpu.matmul %43, %45, %cst_33 {dimension_numbers = #tpu.dot_dimension_numbers<[1], [0], [0], [1], [0, 0, 1, 1], [], []>} : vector<32x128xbf16>, vector<128x128xbf16>, vector<32x128xf32> -> vector<32x128xf32>
    %47 = arith.addf %38, %46 : vector<32x128xf32>
    %c0_i32_34 = arith.constant 0 : i32
    %48 = arith.addi %1, %c0_i32_34 : i32
    %c0_35 = arith.constant 0 : index
    %49 = arith.index_cast %48 : i32 to index
    %c1_36 = arith.constant 1 : index
    %c0_37 = arith.constant 0 : index
    %50 = vector.load %arg4[%c0_35, %49, %c1_36, %c0_37] : memref<1x9x9x128xbf16, #tpu.memory_space<vmem>>, vector<1x4x8x128xbf16>
    %51 = vector.shape_cast %50 : vector<1x4x8x128xbf16> to vector<4x8x128xbf16>
    %52 = vector.shape_cast %51 : vector<4x8x128xbf16> to vector<32x128xbf16>
    %c5 = arith.constant 5 : index
    %c0_38 = arith.constant 0 : index
    %c0_39 = arith.constant 0 : index
    %53 = vector.load %arg6[%c5, %c0_38, %c0_39] : memref<9x128x128xbf16, #tpu.memory_space<vmem>>, vector<1x128x128xbf16>
    %54 = vector.shape_cast %53 : vector<1x128x128xbf16> to vector<128x128xbf16>
    %cst_40 = arith.constant dense<0.000000e+00> : vector<32x128xf32>
    %55 = tpu.matmul %52, %54, %cst_40 {dimension_numbers = #tpu.dot_dimension_numbers<[1], [0], [0], [1], [0, 0, 1, 1], [], []>} : vector<32x128xbf16>, vector<128x128xbf16>, vector<32x128xf32> -> vector<32x128xf32>
    %56 = arith.addf %47, %55 : vector<32x128xf32>
    %c1_i32 = arith.constant 1 : i32
    %57 = arith.addi %1, %c1_i32 : i32
    %c0_41 = arith.constant 0 : index
    %58 = arith.index_cast %57 : i32 to index
    %c0_42 = arith.constant 0 : index
    %c0_43 = arith.constant 0 : index
    %59 = vector.load %arg2[%c0_41, %58, %c0_42, %c0_43] : memref<1x9x9x128xbf16, #tpu.memory_space<vmem>>, vector<1x4x8x128xbf16>
    %60 = vector.shape_cast %59 : vector<1x4x8x128xbf16> to vector<4x8x128xbf16>
    %61 = vector.shape_cast %60 : vector<4x8x128xbf16> to vector<32x128xbf16>
    %c6 = arith.constant 6 : index
    %c0_44 = arith.constant 0 : index
    %c0_45 = arith.constant 0 : index
    %62 = vector.load %arg6[%c6, %c0_44, %c0_45] : memref<9x128x128xbf16, #tpu.memory_space<vmem>>, vector<1x128x128xbf16>
    %63 = vector.shape_cast %62 : vector<1x128x128xbf16> to vector<128x128xbf16>
    %cst_46 = arith.constant dense<0.000000e+00> : vector<32x128xf32>
    %64 = tpu.matmul %61, %63, %cst_46 {dimension_numbers = #tpu.dot_dimension_numbers<[1], [0], [0], [1], [0, 0, 1, 1], [], []>} : vector<32x128xbf16>, vector<128x128xbf16>, vector<32x128xf32> -> vector<32x128xf32>
    %65 = arith.addf %56, %64 : vector<32x128xf32>
    %c1_i32_47 = arith.constant 1 : i32
    %66 = arith.addi %1, %c1_i32_47 : i32
    %c0_48 = arith.constant 0 : index
    %67 = arith.index_cast %66 : i32 to index
    %c0_49 = arith.constant 0 : index
    %c0_50 = arith.constant 0 : index
    %68 = vector.load %arg3[%c0_48, %67, %c0_49, %c0_50] : memref<1x9x9x128xbf16, #tpu.memory_space<vmem>>, vector<1x4x8x128xbf16>
    %69 = vector.shape_cast %68 : vector<1x4x8x128xbf16> to vector<4x8x128xbf16>
    %70 = vector.shape_cast %69 : vector<4x8x128xbf16> to vector<32x128xbf16>
    %c7 = arith.constant 7 : index
    %c0_51 = arith.constant 0 : index
    %c0_52 = arith.constant 0 : index
    %71 = vector.load %arg6[%c7, %c0_51, %c0_52] : memref<9x128x128xbf16, #tpu.memory_space<vmem>>, vector<1x128x128xbf16>
    %72 = vector.shape_cast %71 : vector<1x128x128xbf16> to vector<128x128xbf16>
    %cst_53 = arith.constant dense<0.000000e+00> : vector<32x128xf32>
    %73 = tpu.matmul %70, %72, %cst_53 {dimension_numbers = #tpu.dot_dimension_numbers<[1], [0], [0], [1], [0, 0, 1, 1], [], []>} : vector<32x128xbf16>, vector<128x128xbf16>, vector<32x128xf32> -> vector<32x128xf32>
    %74 = arith.addf %65, %73 : vector<32x128xf32>
    %c1_i32_54 = arith.constant 1 : i32
    %75 = arith.addi %1, %c1_i32_54 : i32
    %c0_55 = arith.constant 0 : index
    %76 = arith.index_cast %75 : i32 to index
    %c1_56 = arith.constant 1 : index
    %c0_57 = arith.constant 0 : index
    %77 = vector.load %arg2[%c0_55, %76, %c1_56, %c0_57] : memref<1x9x9x128xbf16, #tpu.memory_space<vmem>>, vector<1x4x8x128xbf16>
    %78 = vector.shape_cast %77 : vector<1x4x8x128xbf16> to vector<4x8x128xbf16>
    %79 = vector.shape_cast %78 : vector<4x8x128xbf16> to vector<32x128xbf16>
    %c8 = arith.constant 8 : index
    %c0_58 = arith.constant 0 : index
    %c0_59 = arith.constant 0 : index
    %80 = vector.load %arg6[%c8, %c0_58, %c0_59] : memref<9x128x128xbf16, #tpu.memory_space<vmem>>, vector<1x128x128xbf16>
    %81 = vector.shape_cast %80 : vector<1x128x128xbf16> to vector<128x128xbf16>
    %cst_60 = arith.constant dense<0.000000e+00> : vector<32x128xf32>
    %82 = tpu.matmul %79, %81, %cst_60 {dimension_numbers = #tpu.dot_dimension_numbers<[1], [0], [0], [1], [0, 0, 1, 1], [], []>} : vector<32x128xbf16>, vector<128x128xbf16>, vector<32x128xf32> -> vector<32x128xf32>
    %83 = arith.addf %74, %82 : vector<32x128xf32>
    %c0_61 = arith.constant 0 : index
    %c0_62 = arith.constant 0 : index
    %84 = vector.load %arg7[%c0_61, %c0_62] : memref<1x128xf32, #tpu.memory_space<vmem>>, vector<1x128xf32>
    %85 = vector.broadcast %84 : vector<1x128xf32> to vector<32x128xf32>
    %86 = arith.mulf %83, %85 : vector<32x128xf32>
    %c0_63 = arith.constant 0 : index
    %c0_64 = arith.constant 0 : index
    %87 = vector.load %arg8[%c0_63, %c0_64] : memref<1x128xf32, #tpu.memory_space<vmem>>, vector<1x128xf32>
    %88 = vector.broadcast %87 : vector<1x128xf32> to vector<32x128xf32>
    %89 = arith.addf %86, %88 : vector<32x128xf32>
    %cst_65 = arith.constant 0.000000e+00 : f32
    %90 = vector.broadcast %cst_65 : f32 to vector<32x128xf32>
    %91 = arith.maximumf %89, %90 : vector<32x128xf32>
    %92 = arith.truncf %91 : vector<32x128xf32> to vector<32x128xbf16>
    %c0_66 = arith.constant 0 : index
    %c0_67 = arith.constant 0 : index
    %c0_68 = arith.constant 0 : index
    %93 = vector.load %arg12[%c0_66, %c0_67, %c0_68] : memref<1x32x128xbf16, #tpu.memory_space<vmem>>, vector<1x32x128xbf16>
    %94 = vector.shape_cast %93 : vector<1x32x128xbf16> to vector<32x128xbf16>
    %95 = vector.shape_cast %92 : vector<32x128xbf16> to vector<1x32x128xbf16>
    tpu.vector_store %arg12[%c0_66, %c0_67, %c0_68], %95 {strides = array<i32>} : memref<1x32x128xbf16, #tpu.memory_space<vmem>>, vector<1x32x128xbf16>,
    %c0_i32_69 = arith.constant 0 : i32
    %96 = arith.addi %1, %c0_i32_69 : i32
    %c0_70 = arith.constant 0 : index
    %97 = arith.index_cast %96 : i32 to index
    %c0_71 = arith.constant 0 : index
    %c0_72 = arith.constant 0 : index
    %98 = vector.load %arg5[%c0_70, %97, %c0_71, %c0_72] : memref<1x9x9x128xbf16, #tpu.memory_space<vmem>>, vector<1x4x8x128xbf16>
    %99 = vector.shape_cast %98 : vector<1x4x8x128xbf16> to vector<4x8x128xbf16>
    %100 = vector.shape_cast %99 : vector<4x8x128xbf16> to vector<32x128xbf16>
    %c0_73 = arith.constant 0 : index
    %c0_74 = arith.constant 0 : index
    %101 = vector.load %arg9[%c0_73, %c0_74] : memref<128x128xbf16, #tpu.memory_space<vmem>>, vector<128x128xbf16>
    %cst_75 = arith.constant dense<0.000000e+00> : vector<32x128xf32>
    %102 = tpu.matmul %100, %101, %cst_75 {dimension_numbers = #tpu.dot_dimension_numbers<[1], [0], [0], [1], [0, 0, 1, 1], [], []>} : vector<32x128xbf16>, vector<128x128xbf16>, vector<32x128xf32> -> vector<32x128xf32>
    %c0_76 = arith.constant 0 : index
    %c0_77 = arith.constant 0 : index
    %103 = vector.load %arg10[%c0_76, %c0_77] : memref<1x128xf32, #tpu.memory_space<vmem>>, vector<1x128xf32>
    %104 = vector.broadcast %103 : vector<1x128xf32> to vector<32x128xf32>
    %105 = arith.mulf %102, %104 : vector<32x128xf32>
    %c0_78 = arith.constant 0 : index
    %c0_79 = arith.constant 0 : index
    %106 = vector.load %arg11[%c0_78, %c0_79] : memref<1x128xf32, #tpu.memory_space<vmem>>, vector<1x128xf32>
    %107 = vector.broadcast %106 : vector<1x128xf32> to vector<32x128xf32>
    %108 = arith.addf %105, %107 : vector<32x128xf32>
    %c0_80 = arith.constant 0 : index
    %c0_81 = arith.constant 0 : index
    %c0_82 = arith.constant 0 : index
    %109 = vector.load %arg13[%c0_80, %c0_81, %c0_82] : memref<1x32x128xf32, #tpu.memory_space<vmem>>, vector<1x32x128xf32>
    %110 = vector.shape_cast %109 : vector<1x32x128xf32> to vector<32x128xf32>
    %111 = vector.shape_cast %108 : vector<32x128xf32> to vector<1x32x128xf32>
    tpu.vector_store %arg13[%c0_80, %c0_81, %c0_82], %111 {strides = array<i32>} : memref<1x32x128xf32, #tpu.memory_space<vmem>>, vector<1x32x128xf32>,
    return
  }
  func.func @transform_0(%arg0: i32, %arg1: i32) -> (i32, i32, i32, i32) {
    %c0_i32 = arith.constant 0 : i32
    %c0_i32_0 = arith.constant 0 : i32
    %c0_i32_1 = arith.constant 0 : i32
    %c0_i32_2 = arith.constant 0 : i32
    return %arg0, %c0_i32, %c0_i32_0, %c0_i32_1 : i32, i32, i32, i32
  }
  func.func @transform_1(%arg0: i32, %arg1: i32) -> (i32, i32, i32, i32) {
    %c0_i32 = arith.constant 0 : i32
    %c0_i32_0 = arith.constant 0 : i32
    %c0_i32_1 = arith.constant 0 : i32
    %c0_i32_2 = arith.constant 0 : i32
    return %arg0, %c0_i32, %c0_i32_0, %c0_i32_1 : i32, i32, i32, i32
  }
  func.func @transform_2(%arg0: i32, %arg1: i32) -> (i32, i32, i32, i32) {
    %c0_i32 = arith.constant 0 : i32
    %c0_i32_0 = arith.constant 0 : i32
    %c0_i32_1 = arith.constant 0 : i32
    %c0_i32_2 = arith.constant 0 : i32
    return %arg0, %c0_i32, %c0_i32_0, %c0_i32_1 : i32, i32, i32, i32
  }
  func.func @transform_3(%arg0: i32, %arg1: i32) -> (i32, i32, i32, i32) {
    %c0_i32 = arith.constant 0 : i32
    %c0_i32_0 = arith.constant 0 : i32
    %c0_i32_1 = arith.constant 0 : i32
    %c0_i32_2 = arith.constant 0 : i32
    return %arg0, %c0_i32, %c0_i32_0, %c0_i32_1 : i32, i32, i32, i32
  }
  func.func @transform_4(%arg0: i32, %arg1: i32) -> (i32, i32, i32) {
    %c0_i32 = arith.constant 0 : i32
    %c0_i32_0 = arith.constant 0 : i32
    %c0_i32_1 = arith.constant 0 : i32
    %c0_i32_2 = arith.constant 0 : i32
    return %c0_i32, %c0_i32_0, %c0_i32_1 : i32, i32, i32
  }
  func.func @transform_5(%arg0: i32, %arg1: i32) -> (i32, i32) {
    %c0_i32 = arith.constant 0 : i32
    %c0_i32_0 = arith.constant 0 : i32
    %c0_i32_1 = arith.constant 0 : i32
    return %c0_i32, %c0_i32_0 : i32, i32
  }
  func.func @transform_6(%arg0: i32, %arg1: i32) -> (i32, i32) {
    %c0_i32 = arith.constant 0 : i32
    %c0_i32_0 = arith.constant 0 : i32
    %c0_i32_1 = arith.constant 0 : i32
    return %c0_i32, %c0_i32_0 : i32, i32
  }
  func.func @transform_7(%arg0: i32, %arg1: i32) -> (i32, i32) {
    %c0_i32 = arith.constant 0 : i32
    %c0_i32_0 = arith.constant 0 : i32
    %c0_i32_1 = arith.constant 0 : i32
    return %c0_i32, %c0_i32_0 : i32, i32
  }
  func.func @transform_8(%arg0: i32, %arg1: i32) -> (i32, i32) {
    %c0_i32 = arith.constant 0 : i32
    %c0_i32_0 = arith.constant 0 : i32
    %c0_i32_1 = arith.constant 0 : i32
    return %c0_i32, %c0_i32_0 : i32, i32
  }
  func.func @transform_9(%arg0: i32, %arg1: i32) -> (i32, i32) {
    %c0_i32 = arith.constant 0 : i32
    %c0_i32_0 = arith.constant 0 : i32
    %c0_i32_1 = arith.constant 0 : i32
    return %c0_i32, %c0_i32_0 : i32, i32
  }
  func.func @transform_10(%arg0: i32, %arg1: i32) -> (i32, i32, i32) {
    %c0_i32 = arith.constant 0 : i32
    %c0_i32_0 = arith.constant 0 : i32
    return %arg0, %arg1, %c0_i32 : i32, i32, i32
  }
  func.func @transform_11(%arg0: i32, %arg1: i32) -> (i32, i32, i32) {
    %c0_i32 = arith.constant 0 : i32
    %c0_i32_0 = arith.constant 0 : i32
    return %arg0, %arg1, %c0_i32 : i32, i32, i32
  }
}

</mosaic_0001>

<bundles_post_ra>
// kernel: tpu_custom_call.1
= control target key start
LH: loop header
LB: loop body
LE: loop exit
PB: predicated region body
PF: predicated region fallthrough
CT: control target
= control target key end

     0   :  { %s3188_s0 = inlined_call_operand.vmem [shape: bf16[2,9,9,128], index: 0, kind: input, shape index: {}]   ;;  %s3189_s1 = inlined_call_operand.vmem [shape: bf16[2,9,9,128], index: 1, kind: input, shape index: {}]   ;;  %s3190_s2 = inlined_call_operand.vmem [shape: bf16[2,9,9,128], index: 2, kind: input, shape index: {}]   ;;  %s3191_s3 = inlined_call_operand.vmem [shape: bf16[2,9,9,128], index: 3, kind: input, shape index: {}]   ;;  %s3192_s4 = inlined_call_operand.hbm [shape: bf16[9,128,128], index: 4, kind: input, shape index: {}]   ;;  %s3193_s5 = inlined_call_operand.vmem [shape: f32[1,128], index: 5, kind: input, shape index: {}]   ;;  %s3194_s6 = inlined_call_operand.vmem [shape: f32[1,128], index: 6, kind: input, shape index: {}]   ;;  %s3195_s7 = inlined_call_operand.vmem [shape: bf16[128,128], index: 7, kind: input, shape index: {}]   ;;  %s3196_s8 = inlined_call_operand.vmem [shape: f32[1,128], index: 8, kind: input, shape index: {}]   ;;  %s3197_s9 = inlined_call_operand.vmem [shape: f32[1,128], index: 9, kind: input, shape index: {}]   ;;  %s3198_s10 = inlined_call_operand.hbm [shape: bf16[2,64,128], index: 10, kind: output, shape index: {0}]   ;;  %s3199_s11 = inlined_call_operand.hbm [shape: f32[2,64,128], index: 11, kind: output, shape index: {1}]  }
   0x1   :  { %3204 = sst [smem:[#allocation15_spill]] %s3188_s0 }
   0x2   :  { %3205 = sst [smem:[#allocation16_spill]] %s3189_s1 }
   0x3   :  { %3206 = sst [smem:[#allocation17_spill]] %s3190_s2 }
   0x4   :  { %3207 = sst [smem:[#allocation18_spill]] %s3191_s3 }
   0x5   :  { %3208 = sst [smem:[#allocation19_spill]] %s3192_s4 }
   0x6   :  { %17 = vsyncpa [#allocation3], 0 }
   0x7   :  { %18 = vsyncpa [#allocation4], 0 }
   0x8   :  { %20 = vsyncpa [#allocation4 + $0x1], 0 }
   0x9   :  { %21 = vsyncpa [#allocation7], 0 }
   0xa   :  { %23 = vsyncpa [#allocation7 + $0x1], 0  ;;  %s2850_s17 = smov 0   ;;  %s2852_s18 = smov 0  }
   0xb   :  { %s2854_s19 = smov 0   ;;  %s2856_s20 = smov 0  }
   0xc   :  { %s2858_s21 = smov 0   ;;  %s2860_s22 = smov 0  }
   0xd   :  { %s2862_s23 = smov 0   ;;  %s2864_s24 = smov 0  }
   0xe LB: > { %3209 = sst [smem:[#allocation11_spill]] %s2753_s17  ;;  %s1970_s25 = sadd.s32 4294967295, %s2781_s24   ;;  %s2781_s24 = sphi %s2864_s24, %s29_s24   ;;  %s2777_s23 = sphi %s2862_s23, %s3233_s23   ;;  %s2773_s22 = sphi %s2860_s22, %s3228_s22   ;;  %s2769_s21 = sphi %s2858_s21, %s3232_s21   ;;  %s2765_s20 = sphi %s2856_s20, %s3227_s20   ;;  %s2761_s19 = sphi %s2854_s19, %s3231_s19   ;;  %s2757_s18 = sphi %s2852_s18, %s3230_s18   ;;  %s2753_s17 = sphi %s2850_s17, %s3229_s17  }
   0xf   : > { %3210 = sst [smem:[#allocation12_spill]] %s2773_s22  ;;  %s1971_s26 = sadd.s32 4294967294, %s2781_s24  }
  0x10   : > { %s38_s27 = sadd.s32 1, %s2773_s22  ;;  %s41_s28 = sadd.s32 1, %s2777_s23 }
  0x11   : > { %p39_p0 = scmp.ge.s32.totalorder %s38_s27, 2  ;;  %s280_s29 = sadd.s32 1, %s2761_s19 }
  0x12   : > { %p290_p1 = scmp.ne.s32.totalorder %s2761_s19, %s2757_s18  ;;  %p291_p2 = scmp.eq.s32.totalorder %s1970_s25, 3 }
  0x13   : > { %s3235_s27 = smov (%p39_p0, %s38_s27), 0  ;;  %s3237_s28 = smov (!%p39_p0, %s41_s28), %s2777_s23 }
  0x14   : > { %3211 = sst [smem:[#allocation13_spill]] %s3235_s27  ;;  %s276_s30 = ssub.s32 %s2773_s22, %s3235_s27 }
  0x15   : > { %p2902_p3 = por %p291_p2, %p290_p1  ;;  %p43_p4 = scmp.ge.s32.totalorder %s3237_s28, 2 }
  0x16   : > { %p296_p5 = scmp.ne.s32.totalorder %s2757_s18, %s2753_s17  ;;  %p297_p6 = scmp.eq.s32.totalorder %s1971_s26, 3 }
  0x17   : > { %p1972_p7 = scmp.ge.s32.totalorder %s2781_s24, 1  ;;  %s3239_s28 = smov (%p43_p4, %s3237_s28), 0 }
  0x18   : > { %p2911_p8 = por %p297_p6, %p296_p5  ;;  %p332_p9 = scmp.lt.s32.totalorder %s2781_s24, 5 }
  0x19   : > { %s275_s14 = ssub.s32 %s2777_s23, %s3239_s28  ;;  %p2922_p12 = scmp.eq.s32.totalorder %s1970_s25, 0 }
  0x1a   : > { %s3213_s13 = scalar_select %p2911_p8, 1, 0 }
  0x1b   : > { %s277_s15 = sor.u32 %s276_s30, %s275_s14  ;;  %p2918_p10 = pnand %p1972_p7, %p332_p9 }
  0x1c   : > { %3214 = sst [smem:[#allocation14_spill]] %s3213_s13  ;;  %p278_p11 = scmp.eq.s32.totalorder %s277_s15, 0 }
  0x1d   : > { %p2532_p13 = pneg %p2918_p10  ;;  %s3217_s4 = sld [smem:[#allocation19_spill]] }
  0x1e   : > { %s2932_s17 = scalar_select %p278_p11, %s2761_s19, %s280_s29  }
  0x1f   : > { %s2783_s30 = smov [#allocation2]   ;;  %p2533_p0 = pnand %p2922_p12, %p2532_p13 }
  0x20   : > { %s345_s14 = sshll.u32 %s2783_s30, 4  ;;  %s2784_s15 = smov 64   ;;  %s346_s14 = int_to_ptr.vmem [resolvable:$true] %s345_s14 }
  0x21   : > { %s2785_s25 = smov 4   ;;  %408 = sbr.rel (%p2918_p10) target bundleno = 299 (0x12b), region = 60 }
  0x23   : > { %s343_s13 = sshll.u32 %s3217_s4, 4  ;;  %s344_s13 = int_to_ptr.hbm [resolvable:$true] %s343_s13 }
  0x24   : > { %2535 = dma.hbm_to_vmem [thread:$0]  (!%p2533_p0), %s344_s13, 9216, %s346_s14, [#allocation3], %s2784_s15, %s2784_s15, %s2785_s25  }
  0x26   : > { %2740 = dma.done.wait (%p2922_p12), [#allocation3], 9216  }
  0x27   : > { %2742 = vsyncadd (%p2922_p12), [#allocation3], 4294958080  ;;  %p469_p1 = scmp.lt.s32.totalorder %s2769_s21, 1  ;;  %v2417_v0 = vld [vmem:[#allocation2 + $0x78] sm:$0xff]  ;;  %v2416_v4 = vld [vmem:[#allocation2 + $0x70] sm:$0xff]  ;;  %s3218_s0 = sld [smem:[#allocation15_spill]] }
  0x28   : > { %v2406_v1 = vld [vmem:[#allocation2 + $0x38] sm:$0xff]  ;;  %598 = vmatpush.bf16.msra.mxu0 %v2417_v0  ;;  %v2405_v5 = vld [vmem:[#allocation2 + $0x30] sm:$0xff]  ;;  %v2415_v8 = vld [vmem:[#allocation2 + $0x68] sm:$0xff]  ;;  %s2951_s26 = sshll.u32 %s2765_s20, 5  ;;  %vm704_vm0 = vsmask.f32 3328 }
  0x29   : > { %s470_s22 = scalar_select %p469_p1, %s2769_s21, 1  ;;  %v2425_v2 = vld [vmem:[#allocation2 + $0xb8] sm:$0xff]  ;;  %677 = vmatpush.bf16.msra.mxu1 %v2406_v1  ;;  %v2424_v6 = vld [vmem:[#allocation2 + $0xb0] sm:$0xff]  ;;  %v2404_v9 = vld [vmem:[#allocation2 + $0x28] sm:$0xff]  ;;  %vm705_vm1 = vsmask.f32 7440 }
  0x2a   : > { %v2436_v3 = vld [vmem:[#allocation2 + $0xf8] sm:$0xff]  ;;  %836 = vmatpush.bf16.msra.mxu2 %v2425_v2  ;;  %v2435_v7 = vld [vmem:[#allocation2 + $0xf0] sm:$0xff]  ;;  %v2423_v10 = vld [vmem:[#allocation2 + $0xa8] sm:$0xff]  ;;  %s3219_s1 = sld [smem:[#allocation16_spill]]  ;;  %s2387_s15 = sshll.u32 %s2765_s20, 2 }
  0x2b   : > { %s2944_s29 = smul.u32 72, %s470_s22  ;;  %942 = vmatpush.bf16.msra.mxu3 %v2436_v3  ;;  %v2434_v11 = vld [vmem:[#allocation2 + $0xe8] sm:$0xff]  ;;  %v2414_v12 = vld [vmem:[#allocation2 + $0x60] sm:$0xff]  ;;  %v2413_v23 = vld [vmem:[#allocation2 + $0x58] sm:$0xff]  ;;  %s3220_s2 = sld [smem:[#allocation17_spill]] }
  0x2c   : > { %599 = vmatpush.bf16.msra.mxu0 %v2416_v4  ;;  %v2403_v13 = vld [vmem:[#allocation2 + $0x20] sm:$0xff]  ;;  %v2402_v24 = vld [vmem:[#allocation2 + $0x18] sm:$0xff]  ;;  %v2412_v35 = vld [vmem:[#allocation2 + $0x50] sm:$0xff]  ;;  %s3223_s3 = sld [smem:[#allocation18_spill]] }
  0x2d   : > { %678 = vmatpush.bf16.msra.mxu1 %v2405_v5  ;;  %s473_s16 = scalar_lea.vmem %s3218_s0, %s2944_s29  ;;  %v2422_v14 = vld [vmem:[#allocation2 + $0xa0] sm:$0xff]  ;;  %v2421_v27 = vld [vmem:[#allocation2 + $0x98] sm:$0xff]  ;;  %v2401_v36 = vld [vmem:[#allocation2 + $0x10] sm:$0xff] }
  0x2e   : > { %837 = vmatpush.bf16.msra.mxu2 %v2424_v6  ;;  %s2954_s30 = scalar_lea.vmem %s473_s16, %s2951_s26  ;;  %v2433_v15 = vld [vmem:[#allocation2 + $0xe0] sm:$0xff]  ;;  %v2432_v28 = vld [vmem:[#allocation2 + $0xd8] sm:$0xff]  ;;  %v2420_v38 = vld [vmem:[#allocation2 + $0x90] sm:$0xff] }
  0x2f   : > { %943 = vmatpush.bf16.msra.mxu3 %v2435_v7  ;;  %v696_v16 = vld [vmem:[%s2954_s30] sm:$0xf]  ;;  %v697_v17 = vld [vmem:[%s2954_s30 + $0x4] sm:$0x1]  ;;  %v698_v18 = vld [vmem:[%s2954_s30 + $0x8] sm:$0xf] }
  0x30   : > { %600 = vmatpush.bf16.msra.mxu0 %v2415_v8  ;;  %v699_v19 = vld [vmem:[%s2954_s30 + $0xc] sm:$0x1]  ;;  %v708_v20 = vshrl.u32 %v696_v16, 16  ;;  %v711_v21 = vshll.u32 %v696_v16, 16  ;;  %v722_v22 = vshrl.u32 %v698_v18, 16  ;;  %v717_v25 = vshll.u32 %v697_v17, 16  ;;  %s478_s25 = scalar_lea.vmem %s3219_s1, %s2944_s29  ;;  %vm2970_vm2 = vmor %vm704_vm0, %vm705_vm1 }
  0x31   : > { %679 = vmatpush.bf16.msra.mxu1 %v2404_v9  ;;  %v725_v26 = vshll.u32 %v698_v18, 16  ;;  %v731_v32 = vshll.u32 %v699_v19, 16  ;;  %v2431_v39 = vld [vmem:[#allocation2 + $0xd0] sm:$0xff]  ;;  %s483_s13 = scalar_lea.vmem %s3220_s2, %s2944_s29  ;;  %v2411_v45 = vld [vmem:[#allocation2 + $0x48] sm:$0xff]  ;;  %s2975_s16 = scalar_lea.vmem %s478_s25, %s2951_s26  ;;  %v702_v48 = vld [vmem:[%s2954_s30 + $0x18] sm:$0xf] }
  0x32   : > { %838 = vmatpush.bf16.msra.mxu2 %v2423_v10  ;;  %v710_v29 = vrot.slane %v708_v20, 4  ;;  %v713_v30 = vrot.slane %v711_v21, 5  ;;  %v724_v31 = vrot.slane %v722_v22, 4  ;;  %v719_v41 = vrot.slane %v717_v25, 5  ;;  %v2400_v46 = vld [vmem:[#allocation2 + $0x8] sm:$0xff]  ;;  %s2980_s14 = scalar_lea.vmem %s483_s13, %s2951_s26  ;;  %v2410_v55 = vld [vmem:[#allocation2 + $0x40] sm:$0xff]  ;;  %s488_s22 = scalar_lea.vmem %s3223_s3, %s2944_s29 }
  0x33   : > { %944 = vmatpush.bf16.msra.mxu3 %v2434_v11  ;;  %v727_v33 = vrot.slane %v725_v26, 5  ;;  %v733_v42 = vrot.slane %v731_v32, 5  ;;  %v700_v47 = vld [vmem:[%s2954_s30 + $0x10] sm:$0xf]  ;;  %v2419_v49 = vld [vmem:[#allocation2 + $0x88] sm:$0xff]  ;;  %v2399_v56 = vld [vmem:[#allocation2] sm:$0xff]  ;;  %s3015_s27 = scalar_lea.vmem %s488_s22, %s2951_s26 }
  0x34   : > { %601 = vmatpush.bf16.msra.mxu0 %v2414_v12  ;;  %v714_v34 = vor.u32 %v713_v30, %v710_v29  ;;  %v2430_v50 = vld [vmem:[#allocation2 + $0xc8] sm:$0xff]  ;;  %v736_v53 = vshrl.u32 %v700_v47, 16  ;;  %v739_v54 = vshll.u32 %v700_v47, 16  ;;  %v750_v57 = vshrl.u32 %v702_v48, 16  ;;  %v2418_v59 = vld [vmem:[#allocation2 + $0x80] sm:$0xff]  ;;  %v2466_v5 = vld [vmem:[#allocation2 + $0x1b8] sm:$0xff] }
  0x35   : > { %680 = vmatpush.bf16.msra.mxu1 %v2403_v13  ;;  %v728_v37 = vor.u32 %v727_v33, %v724_v31  ;;  %v753_v58 = vshll.u32 %v702_v48, 16  ;;  %v1989_v60 = vld [vmem:[%s2975_s16] sm:$0xf]  ;;  %v2408_v61 = vld [vmem:[%s2975_s16 + $0x4] sm:$0xf0]  ;;  %v2447_v10 = vld [vmem:[#allocation2 + $0x138] sm:$0xff] }
  0x36   : > { %839 = vmatpush.bf16.msra.mxu2 %v2422_v14  ;;  %v715_v40 = vrot.slane %v714_v34, 4  ;;  %v2029_v62 = vld [vmem:[%s2954_s30] sm:$0xf]  ;;  %v2397_v63 = vld [vmem:[%s2954_s30 + $0x4] sm:$0xf0]  ;;  %v738_v6 = vrot.slane %v736_v53, 4  ;;  %v1990_v13 = vor.u32 %v2408_v61, %v1989_v60 }
  0x37   : > { %945 = vmatpush.bf16.msra.mxu3 %v2433_v15  ;;  %v729_v44 = vrot.slane %v728_v37, 4  ;;  %v2102_v2 = vld [vmem:[%s2980_s14] sm:$0xf]  ;;  %v2427_v3 = vld [vmem:[%s2980_s14 + $0x4] sm:$0xf0]  ;;  %v741_v7 = vrot.slane %v739_v54, 5  ;;  %v2030_v14 = vor.u32 %v2397_v63, %v2029_v62 }
  0x38   : > { %602 = vmatpush.bf16.msra.mxu0 %v2413_v23  ;;  %v720_v51 = vsel %vm2970_vm2, %v715_v40, %v719_v41  ;;  %v2429_v4 = vld [vmem:[#allocation2 + $0xc0] sm:$0xff]  ;;  %v752_v8 = vrot.slane %v750_v57, 4  ;;  %v755_v9 = vrot.slane %v753_v58, 5  ;;  %v701_v11 = vld [vmem:[%s2954_s30 + $0x14] sm:$0x1]  ;;  %v2103_v16 = vor.u32 %v2427_v3, %v2102_v2  ;;  %v2477_v17 = vld [vmem:[#allocation2 + $0x1f8] sm:$0xff] }
  0x39   : > { %681 = vmatpush.bf16.msra.mxu1 %v2402_v24  ;;  %v734_v52 = vsel %vm2970_vm2, %v729_v44, %v733_v42  ;;  %v780_v0 = vunpack.c.l.b16 %v720_v51  ;;  %v703_v12 = vld [vmem:[%s2954_s30 + $0x1c] sm:$0x1]  ;;  %v742_v19 = vor.u32 %v741_v7, %v738_v6  ;;  %v745_v20 = vshll.u32 %v701_v11, 16  ;;  %v2465_v23 = vld [vmem:[#allocation2 + $0x1b0] sm:$0xff]  ;;  %v2445_v32 = vld [vmem:[#allocation2 + $0x128] sm:$0xff]  ;;  %s2671_s2 = scalar_lea.hbm %s3199_s11, 128 }
  0x3a   : > { %840 = vmatpush.bf16.msra.mxu2 %v2421_v27  ;;  %v781_v1 = vunpack.c.l.b16 %v734_v52  ;;  %v2455_v18 = vld [vmem:[#allocation2 + $0x178] sm:$0xff]  ;;  %v756_v21 = vor.u32 %v755_v9, %v752_v8  ;;  %v759_v22 = vshll.u32 %v703_v12, 16  ;;  %v2446_v24 = vld [vmem:[#allocation2 + $0x130] sm:$0xff]  ;;  %v2464_v27 = vld [vmem:[#allocation2 + $0x1a8] sm:$0xff] }
  0x3b   : > { %946 = vmatpush.bf16.msra.mxu3 %v2432_v28  ;;  %v2476_v25 = vld [vmem:[#allocation2 + $0x1f0] sm:$0xff]  ;;  %v743_v28 = vrot.slane %v742_v19, 4  ;;  %v747_v29 = vrot.slane %v745_v20, 5  ;;  %v1071_v33 = vld [vmem:[%s2980_s14] sm:$0xf]  ;;  %v2443_v57 = vld [vmem:[#allocation2 + $0x118] sm:$0xff] }
  0x3c   : > { %603 = vmatpush.bf16.msra.mxu0 %v2412_v35  ;;  %v784_v15 = vpack.c.b16 %v781_v1, %v780_v0  ;;  %v2454_v26 = vld [vmem:[#allocation2 + $0x170] sm:$0xff]  ;;  %v757_v30 = vrot.slane %v756_v21, 4  ;;  %v761_v31 = vrot.slane %v759_v22, 5  ;;  %v1073_v34 = vld [vmem:[%s2980_s14 + $0x8] sm:$0xf]  ;;  %v2444_v40 = vld [vmem:[#allocation2 + $0x120] sm:$0xff] }
  0x3d   : > { %682 = vmatpush.bf16.msra.mxu1 %v2401_v36  ;;  %v2475_v35 = vld [vmem:[#allocation2 + $0x1e8] sm:$0xff]  ;;  %v748_v37 = vsel %vm2970_vm2, %v743_v28, %v747_v29  ;;  %v1080_v41 = vshrl.u32 %v1071_v33, 16  ;;  %v1083_v42 = vshll.u32 %v1071_v33, 16  ;;  %v1094_v44 = vshrl.u32 %v1073_v34, 16  ;;  %v1993_v47 = vld [vmem:[%s2975_s16 + $0x10] sm:$0xf] }
  0x3e   : > { %841 = vmatpush.bf16.msra.mxu2 %v2420_v38  ;;  %v2453_v36 = vld [vmem:[#allocation2 + $0x168] sm:$0xff]  ;;  %v762_v38 = vsel %vm2970_vm2, %v757_v30, %v761_v31  ;;  %v2409_v48 = vld [vmem:[%s2975_s16 + $0x14] sm:$0xf0]  ;;  %v782_v51 = vunpack.c.l.b16 %v748_v37  ;;  %v2452_v53 = vld [vmem:[#allocation2 + $0x160] sm:$0xff] }
  0x3f   : > { %947 = vmatpush.bf16.msra.mxu3 %v2431_v39  ;;  %v2463_v39 = vld [vmem:[#allocation2 + $0x1a0] sm:$0xff]  ;;  %v783_v52 = vunpack.c.l.b16 %v762_v38  ;;  %v2106_v54 = vld [vmem:[%s2980_s14 + $0x10] sm:$0xf]  ;;  %v1082_v58 = vrot.slane %v1080_v41, 4  ;;  %v1096_v60 = vrot.slane %v1094_v44, 4  ;;  %v1994_v62 = vor.u32 %v2409_v48, %v1993_v47  ;;  %v2449_v28 = vld [vmem:[#allocation2 + $0x148] sm:$0xff] }
  0x40   : > { %604 = vmatpush.bf16.msra.mxu0 %v2411_v45  ;;  %v1097_v45 = vshll.u32 %v1073_v34, 16  ;;  %v1072_v0 = vld [vmem:[%s2980_s14 + $0x4] sm:$0x1]  ;;  %v1074_v1 = vld [vmem:[%s2980_s14 + $0xc] sm:$0x1]  ;;  %v2461_v6 = vld [vmem:[#allocation2 + $0x190] sm:$0xff] }
  0x41   : > { %683 = vmatpush.bf16.msra.mxu1 %v2400_v46  ;;  %v2474_v46 = vld [vmem:[#allocation2 + $0x1e0] sm:$0xff]  ;;  %v785_v2 = vpack.c.b16 %v783_v52, %v782_v51  ;;  %v2442_v7 = vld [vmem:[#allocation2 + $0x110] sm:$0xff]  ;;  %v1089_v9 = vshll.u32 %v1072_v0, 16  ;;  %v1103_v11 = vshll.u32 %v1074_v1, 16  ;;  %v1077_v21 = vld [vmem:[%s2980_s14 + $0x18] sm:$0xf] }
  0x42   : > { %842 = vmatpush.bf16.msra.mxu2 %v2419_v49  ;;  %v2033_v49 = vld [vmem:[%s2954_s30 + $0x10] sm:$0xf]  ;;  %v1099_v61 = vrot.slane %v1097_v45, 5  ;;  %v2459_v29 = vld [vmem:[#allocation2 + $0x180] sm:$0xff]  ;;  %v1122_v30 = vshrl.u32 %v1077_v21, 16  ;;  %v1125_v31 = vshll.u32 %v1077_v21, 16 }
  0x43   : > { %948 = vmatpush.bf16.msra.mxu3 %v2430_v50  ;;  %v2398_v50 = vld [vmem:[%s2954_s30 + $0x14] sm:$0xf0]  ;;  %v2472_v12 = vld [vmem:[#allocation2 + $0x1d0] sm:$0xff]  ;;  %v1105_v20 = vrot.slane %v1103_v11, 5  ;;  %v2440_v33 = vld [vmem:[#allocation2 + $0x100] sm:$0xff] }
  0x44   : > { %605 = vmatpush.bf16.msra.mxu0 %v2410_v55  ;;  %v2428_v55 = vld [vmem:[%s2980_s14 + $0x14] sm:$0xf0]  ;;  %v2034_v63 = vor.u32 %v2398_v50, %v2033_v49  ;;  %v2143_v34 = vld [vmem:[%s3015_s27] sm:$0xf]  ;;  %v2221_v41 = vld [vmem:[%s2954_s30 + $0x8] sm:$0xf] }
  0x45   : > { %684 = vmatpush.bf16.msra.mxu1 %v2399_v56  ;;  %v2462_v56 = vld [vmem:[#allocation2 + $0x198] sm:$0xff]  ;;  %v2107_v3 = vor.u32 %v2428_v55, %v2106_v54  ;;  %v2312_v48 = vld [vmem:[%s2954_s30 + $0x24] sm:$0x1]  ;;  %v2468_v54 = vld [vmem:[%s2975_s16 + $0xc] sm:$0xf0] }
  0x46   : > { %843 = vmatpush.bf16.msra.mxu2 %v2418_v59  ;;  %v1085_v59 = vrot.slane %v1083_v42, 5  ;;  %v2457_v42 = vld [vmem:[%s2954_s30 + $0xc] sm:$0xf0]  ;;  %v2485_v44 = vld [vmem:[#allocation2 + $0x238] sm:$0xff]  ;;  %v2305_v21 = vld [vmem:[%s2954_s30 + $0x8] sm:$0xf] }
  0x47   : > { %949 = vmatpush.bf16.msra.mxu3 %v2429_v4  ;;  %606 = vmatmul.bf16.vlgmr.msra.gmra.mxu0 %v1990_v13  ;;  %v2473_v4 = vld [vmem:[#allocation2 + $0x1d8] sm:$0xff]  ;;  %v1075_v13 = vld [vmem:[%s2980_s14 + $0x10] sm:$0xf] }
  0x48   : > { %1048 = vmatpush.bf16.msrb.mxu0 %v2447_v10  ;;  %685 = vmatmul.bf16.vlgmr.msra.gmra.mxu1 %v2030_v14  ;;  %v1086_v8 = vor.u32 %v1085_v59, %v1082_v58  ;;  %v1100_v10 = vor.u32 %v1099_v61, %v1096_v60  ;;  %v2450_v14 = vld [vmem:[#allocation2 + $0x150] sm:$0xff]  ;;  %v1108_v22 = vshrl.u32 %v1075_v13, 16  ;;  %v2310_v47 = vld [vmem:[%s2954_s30 + $0x1c] sm:$0x1]  ;;  %v1127_v58 = vrot.slane %v1125_v31, 5 }
  0x49   : > { %844 = vmatmul.bf16.vlgmr.msra.gmra.mxu2 %v784_v15  ;;  %1208 = vmatpush.bf16.msrb.mxu1 %v2455_v18  ;;  %v2460_v15 = vld [vmem:[#allocation2 + $0x188] sm:$0xff]  ;;  %v1091_v18 = vrot.slane %v1089_v9, 5  ;;  %v1491_v50 = vshll.u32 %v2310_v47, 16  ;;  %v2495_v59 = vld [vmem:[%s3195_s7 + $0x38] sm:$0xff]  ;;  %v1076_v60 = vld [vmem:[%s2980_s14 + $0x14] sm:$0x1] }
  0x4a   : > { %1316 = vmatpush.bf16.msrb.mxu2 %v2466_v5  ;;  %950 = vmatmul.bf16.vlgmr.msra.gmra.mxu3 %v2103_v16  ;;  %v2451_v5 = vld [vmem:[#allocation2 + $0x158] sm:$0xff]  ;;  %v2441_v16 = vld [vmem:[#allocation2 + $0x108] sm:$0xff]  ;;  %v1101_v19 = vrot.slane %v1100_v10, 4  ;;  %v1110_v45 = vrot.slane %v1108_v22, 4  ;;  %v1117_v11 = vshll.u32 %v1076_v60, 16  ;;  %v1454_v31 = vshrl.u32 %v2305_v21, 16 }
  0x4b   : > { %1422 = vmatpush.bf16.msrb.mxu3 %v2477_v17  ;;  %v1087_v17 = vrot.slane %v1086_v8, 4  ;;  %v2307_v22 = vld [vmem:[%s2954_s30 + $0x10] sm:$0xf] }
  0x4c   : > { %1049 = vmatpush.bf16.msrb.mxu0 %v2446_v24  ;;  %v2309_v24 = vld [vmem:[%s2954_s30 + $0x18] sm:$0xf]  ;;  %v1106_v37 = vsel %vm2970_vm2, %v1101_v19, %v1105_v20 }
  0x4d   : > { %1209 = vmatpush.bf16.msrb.mxu1 %v2454_v26  ;;  %v1482_v26 = vshrl.u32 %v2309_v24, 16 }
  0x4e   : > { %1317 = vmatpush.bf16.msrb.mxu2 %v2465_v23  ;;  %v1111_v23 = vshll.u32 %v1075_v13, 16  ;;  %v2494_v13 = vld [vmem:[%s3195_s7 + $0x30] sm:$0xff] }
  0x4f   : > { %1423 = vmatpush.bf16.msrb.mxu3 %v2476_v25  ;;  %v2471_v25 = vld [vmem:[#allocation2 + $0x1c8] sm:$0xff]  ;;  %v1484_v38 = vrot.slane %v1482_v26, 4  ;;  %v1119_v26 = vrot.slane %v1117_v11, 5 }
  0x50   : > { %1050 = vmatpush.bf16.msrb.mxu0 %v2445_v32  ;;  %v2311_v32 = vld [vmem:[%s2954_s30 + $0x20] sm:$0xf] }
  0x51   : > { %1210 = vmatpush.bf16.msrb.mxu1 %v2453_v36  ;;  %v1092_v36 = vsel %vm2970_vm2, %v1087_v17, %v1091_v18  ;;  %v1496_v51 = vshrl.u32 %v2311_v32, 16  ;;  %v1499_v52 = vshll.u32 %v2311_v32, 16  ;;  %v2483_v18 = vld [vmem:[#allocation2 + $0x228] sm:$0xff]  ;;  %v1457_v32 = vshll.u32 %v2305_v21, 16 }
  0x52   : > { %1318 = vmatpush.bf16.msrb.mxu2 %v2464_v27  ;;  %v1485_v27 = vshll.u32 %v2309_v24, 16  ;;  %v1152_v55 = vunpack.c.l.b16 %v1092_v36  ;;  %v2493_v24 = vld [vmem:[%s3195_s7 + $0x28] sm:$0xff]  ;;  %v2147_v36 = vld [vmem:[%s3015_s27 + $0x10] sm:$0xf] }
  0x53   : > { %1424 = vmatpush.bf16.msrb.mxu3 %v2475_v35  ;;  %v2438_v35 = vld [vmem:[%s3015_s27 + $0x4] sm:$0xf0]  ;;  %v1501_v0 = vrot.slane %v1499_v52, 5  ;;  %v1459_v47 = vrot.slane %v1457_v32, 5  ;;  %v2306_v52 = vld [vmem:[%s2954_s30 + $0xc] sm:$0x1] }
  0x54   : > { %1051 = vmatpush.bf16.msrb.mxu0 %v2444_v40  ;;  %v2448_v40 = vld [vmem:[#allocation2 + $0x140] sm:$0xff]  ;;  %v1487_v49 = vrot.slane %v1485_v27, 5  ;;  %v2144_v1 = vor.u32 %v2438_v35, %v2143_v34  ;;  %v1471_v34 = vshll.u32 %v2307_v22, 16  ;;  %v1463_v60 = vshll.u32 %v2306_v52, 16 }
  0x55   : > { %1211 = vmatpush.bf16.msrb.mxu1 %v2452_v53  ;;  %v2267_v53 = vld [vmem:[%s2975_s16 + $0x8] sm:$0xf]  ;;  %v2492_v35 = vld [vmem:[%s3195_s7 + $0x20] sm:$0xff] }
  0x56   : > { %1319 = vmatpush.bf16.msrb.mxu2 %v2463_v39  ;;  %v2470_v39 = vld [vmem:[#allocation2 + $0x1c0] sm:$0xff]  ;;  %v1488_v61 = vor.u32 %v1487_v49, %v1484_v38  ;;  %v2225_v38 = vld [vmem:[%s2954_s30 + $0x18] sm:$0xf]  ;;  %v1473_v49 = vrot.slane %v1471_v34, 5 }
  0x57   : > { %1425 = vmatpush.bf16.msrb.mxu3 %v2474_v46  ;;  %611 = vmatmul.bf16.gmra.mxu0 %v1994_v62  ;;  %v1113_v46 = vrot.slane %v1111_v23, 5  ;;  %v1493_v62 = vrot.slane %v1491_v50, 5 }
  0x58   : > { %1052 = vmatpush.bf16.msrb.mxu0 %v2443_v57  ;;  %690 = vmatmul.bf16.gmra.mxu1 %v2034_v63  ;;  %v1124_v57 = vrot.slane %v1122_v30, 4  ;;  %v1498_v63 = vrot.slane %v1496_v51, 4 }
  0x59   : > { %849 = vmatmul.bf16.gmra.mxu2 %v785_v2  ;;  %1212 = vmatpush.bf16.msrb.mxu1 %v2451_v5  ;;  %v2484_v2 = vld [vmem:[#allocation2 + $0x230] sm:$0xff]  ;;  %v2222_v5 = vor.u32 %v2457_v42, %v2221_v41  ;;  %v1114_v10 = vor.u32 %v1113_v46, %v1110_v45  ;;  %v2458_v41 = vld [vmem:[%s2954_s30 + $0x1c] sm:$0xf0]  ;;  %v2271_v42 = vld [vmem:[%s2975_s16 + $0x18] sm:$0xf]  ;;  %v1456_v46 = vrot.slane %v1454_v31, 4 }
  0x5a   : > { %1320 = vmatpush.bf16.msrb.mxu2 %v2462_v56  ;;  %955 = vmatmul.bf16.gmra.mxu3 %v2107_v3  ;;  %v1153_v56 = vunpack.c.l.b16 %v1106_v37  ;;  %v1078_v3 = vld [vmem:[%s2980_s14 + $0x1c] sm:$0x1]  ;;  %v1502_v8 = vor.u32 %v1501_v0, %v1498_v63  ;;  %v2439_v37 = vld [vmem:[%s3015_s27 + $0x14] sm:$0xf0]  ;;  %v2469_v45 = vld [vmem:[%s2975_s16 + $0x1c] sm:$0xf0] }
  0x5b   : > { %1426 = vmatpush.bf16.msrb.mxu3 %v2473_v4  ;;  %v1505_v4 = vshll.u32 %v2312_v48, 16  ;;  %v2490_v0 = vld [vmem:[%s3195_s7 + $0x10] sm:$0xff]  ;;  %s2388_s14 = sshll.u32 %s2769_s21, 3 }
  0x5c   : > { %1053 = vmatpush.bf16.msrb.mxu0 %v2442_v7  ;;  %v1489_v7 = vrot.slane %v1488_v61, 4  ;;  %v1156_v9 = vpack.c.b16 %v1153_v56, %v1152_v55  ;;  %v1503_v17 = vrot.slane %v1502_v8, 4  ;;  %v2148_v55 = vor.u32 %v2439_v37, %v2147_v36  ;;  %s3107_s29 = sadd.s32 %s2388_s14, %s2387_s15 }
  0x5d   : > { %1213 = vmatpush.bf16.msrb.mxu1 %v2450_v14  ;;  %v1128_v14 = vor.u32 %v1127_v58, %v1124_v57  ;;  %v2226_v56 = vor.u32 %v2458_v41, %v2225_v38  ;;  %v2272_v57 = vor.u32 %v2469_v45, %v2271_v42  ;;  %v2480_v58 = vld [vmem:[#allocation2 + $0x210] sm:$0xff]  ;;  %s2392_s21 = sshll.u32 %s3107_s29, 3  ;;  %s2389_s22 = sshll.u32 %s3107_s29, 2 }
  0x5e   : > { %1321 = vmatpush.bf16.msrb.mxu2 %v2461_v6  ;;  %v2268_v6 = vor.u32 %v2468_v54, %v2267_v53  ;;  %v2308_v53 = vld [vmem:[%s2954_s30 + $0x14] sm:$0x1]  ;;  %v2491_v54 = vld [vmem:[%s3195_s7 + $0x18] sm:$0xff]  ;;  %s1790_s15 = scalar_lea.hbm %s3199_s11, %s2392_s21 }
  0x5f   : > { %1427 = vmatpush.bf16.msrb.mxu3 %v2472_v12  ;;  %v1507_v12 = vrot.slane %v1505_v4, 5  ;;  %v1129_v27 = vrot.slane %v1128_v14, 4  ;;  %v2487_v14 = vld [vmem:[%s3015_s27 + $0x14] sm:$0xf0]  ;;  %s1793_s26 = sshll.u32 %s1790_s15, 4  ;;  %s3131_s26 = int_to_ptr.hbm [resolvable:$true] %s1793_s26 }
  0x60   : > { %1054 = vmatpush.bf16.msrb.mxu0 %v2441_v16  ;;  %v1494_v16 = vsel %vm2970_vm2, %v1489_v7, %v1493_v62  ;;  %v1477_v62 = vshll.u32 %v2308_v53, 16  ;;  %v2478_v7 = vld [vmem:[#allocation2 + $0x200] sm:$0xff]  ;;  %s2665_s1 = sshra.s32 %s3131_s26, 4  ;;  %s2666_s1 = int_to_ptr.hbm [resolvable:$true] %s2665_s1 }
  0x61   : > { %1214 = vmatpush.bf16.msrb.mxu1 %v2449_v28  ;;  %v3041_v19 = vunpack.c.l.b16 %v1494_v16  ;;  %v1508_v20 = vsel %vm2970_vm2, %v1503_v17, %v1507_v12  ;;  %v2486_v16 = vld [vmem:[%s3015_s27 + $0x4] sm:$0xf0]  ;;  %s2667_s30 = scalar_lea.hbm %s2666_s1, 32  ;;  %p2672_p6 = scmp.lt.s32.totalorder %s2666_s1, %s3199_s11 }
  0x62   : > { %1322 = vmatpush.bf16.msrb.mxu2 %v2460_v15  ;;  %v1131_v15 = vshll.u32 %v1078_v3, 16  ;;  %v3047_v23 = vunpack.c.l.b16 %v1508_v20  ;;  %v1465_v3 = vrot.slane %v1463_v60, 5  ;;  %p2668_p2 = scmp.ne.s32.totalorder %s2666_s1, %s2667_s30  ;;  %p2673_p7 = scmp.lt.s32.totalorder %s2671_s2, %s2667_s30 }
  0x63   : > { %1428 = vmatpush.bf16.msrb.mxu3 %v2471_v25  ;;  %v1115_v25 = vrot.slane %v1114_v10, 4  ;;  %v2488_v10 = vld [vmem:[%s3195_s7] sm:$0xff] }
  0x64   : > { %1055 = vmatpush.bf16.msrb.mxu0 %v2440_v33  ;;  %v1133_v28 = vrot.slane %v1131_v15, 5  ;;  %v1531_v30 = vpack.c.b16 %v3047_v23, %v3041_v19  ;;  %v1468_v33 = vshrl.u32 %v2307_v22, 16  ;;  %v2347_v15 = vld [vmem:[%s3015_s27] sm:$0xf]  ;;  %p2669_p4 = pnand %p2668_p2, %p2902_p3  ;;  %p2674_p9 = por %p2673_p7, %p2672_p6 }
  0x65   : > { %1215 = vmatpush.bf16.msrb.mxu1 %v2448_v40 }
  0x66   : > { %1323 = vmatpush.bf16.msrb.mxu2 %v2459_v29  ;;  %v2482_v29 = vld [vmem:[#allocation2 + $0x220] sm:$0xff]  ;;  %v1134_v40 = vsel %vm2970_vm2, %v1129_v27, %v1133_v28  ;;  %v1470_v48 = vrot.slane %v1468_v33, 4  ;;  %p2670_p5 = pneg %p2669_p4 }
  0x67   : > { %1429 = vmatpush.bf16.msrb.mxu3 %v2470_v39  ;;  %1056 = vmatmul.bf16.vlgmr.msrb.gmra.mxu0 %v2144_v1  ;;  %v1120_v39 = vsel %vm2970_vm2, %v1115_v25, %v1119_v26  ;;  %v1155_v51 = vunpack.c.l.b16 %v1134_v40  ;;  %v2479_v1 = vld [vmem:[#allocation2 + $0x208] sm:$0xff] }
  0x68   : > { %1582 = vmatpush.bf16.msra.mxu0 %v2485_v44  ;;  %1216 = vmatmul.bf16.vlgmr.msrb.gmra.mxu1 %v1156_v9  ;;  %v1154_v50 = vunpack.c.l.b16 %v1120_v39  ;;  %v1474_v61 = vor.u32 %v1473_v49, %v1470_v48  ;;  %p2675_p10 = pnand %p2674_p9, %p2670_p5 }
  0x69   : > { %1713 = vmatpush.bf16.msra.mxu1 %v2495_v59  ;;  %1324 = vmatmul.bf16.vlgmr.msrb.gmra.mxu2 %v2222_v5  ;;  %v1479_v5 = vrot.slane %v1477_v62, 5 }
  0x6a   : > { %2507 = vmatpush.bf16.msra.mxu2 %v2485_v44  ;;  %1430 = vmatmul.bf16.vlgmr.msrb.gmra.mxu3 %v2268_v6  ;;  %v2481_v44 = vld [vmem:[#allocation2 + $0x218] sm:$0xff]  ;;  %v1157_v63 = vpack.c.b16 %v1155_v51, %v1154_v50  ;;  %v1475_v4 = vrot.slane %v1474_v61, 4  ;;  %v2489_v6 = vld [vmem:[%s3195_s7 + $0x8] sm:$0xff] }
  0x6b   : > { %2515 = vmatpush.bf16.msra.mxu3 %v2495_v59  ;;  %v1460_v59 = vor.u32 %v1459_v47, %v1456_v46 }
  0x6c   : > { %1583 = vmatpush.bf16.msra.mxu0 %v2484_v2  ;;  %v1480_v9 = vsel %vm2970_vm2, %v1475_v4, %v1479_v5  ;;  %v2619_v4 = vld [vmem:[%s3196_s8] ss:$0 sm:$0xff] }
  0x6d   : > { %1714 = vmatpush.bf16.msra.mxu1 %v2494_v13  ;;  %v1527_v12 = vunpack.c.l.b16 %v1480_v9 }
  0x6e   : > { %2508 = vmatpush.bf16.msra.mxu2 %v2484_v2  ;;  %v1461_v2 = vrot.slane %v1460_v59, 4 }
  0x6f   : > { %2516 = vmatpush.bf16.msra.mxu3 %v2494_v13  ;;  %v2351_v13 = vld [vmem:[%s3015_s27 + $0x10] sm:$0xf]  ;;  %s3093_s27 = sand.u32 1, %s2757_s18  }
  0x70   : > { %1584 = vmatpush.bf16.msra.mxu0 %v2483_v18  ;;  %v1466_v8 = vsel %vm2970_vm2, %v1461_v2, %v1465_v3  ;;  %v2352_v43 = vor.u32 %v2487_v14, %v2351_v13  ;;  %s1978_s13 = sshll.u32 %s3093_s27, 5  ;;  %v2617_v14 = vld [vmem:[%s3193_s5] ss:$0 sm:$0xff]  ;;  %s1977_s25 = sshll.u32 %s3093_s27, 4 }
  0x71   : > { %1715 = vmatpush.bf16.msra.mxu1 %v2493_v24  ;;  %v1526_v11 = vunpack.c.l.b16 %v1466_v8  ;;  %v2620_v8 = vld [vmem:[%s3197_s9] ss:$0 sm:$0xff]  ;;  %s3112_s20 = scalar_lea.vmem [#allocation6], %s1978_s13  ;;  %s3129_s13 = scalar_lea.hbm %s3198_s10, %s2389_s22 }
  0x72   : > { %2509 = vmatpush.bf16.msra.mxu2 %v2483_v18  ;;  %v2348_v18 = vor.u32 %v2486_v16, %v2347_v15  ;;  %s1791_s14 = sshll.u32 %s3112_s20, 4  ;;  %s461_s29 = scalar_lea.vmem [#allocation5], %s1977_s25  ;;  %s3124_s14 = int_to_ptr.vmem [resolvable:$true] %s1791_s14 }
  0x73   : > { %2517 = vmatpush.bf16.msra.mxu3 %v2493_v24  ;;  %v1530_v17 = vpack.c.b16 %v1527_v12, %v1526_v11  ;;  %s1772_s16 = sshll.u32 %s461_s29, 4  ;;  %s1774_s15 = sshll.u32 %s3129_s13, 4  ;;  %s1773_s16 = int_to_ptr.vmem [resolvable:$true] %s1772_s16  ;;  %s1775_s15 = int_to_ptr.hbm [resolvable:$true] %s1774_s15 }
  0x74   : > { %1585 = vmatpush.bf16.msra.mxu0 %v2482_v29  ;;  %s1758_s0 = scalar_lea.sflag [#allocation7], %s3093_s27 }
  0x75   : > { %1716 = vmatpush.bf16.msra.mxu1 %v2492_v35 }
  0x76   : > { %2510 = vmatpush.bf16.msra.mxu2 %v2482_v29 }
  0x77   : > { %2518 = vmatpush.bf16.msra.mxu3 %v2492_v35  ;;  %1061 = vmatmul.bf16.gmra.mxu0 %v2148_v55 }
  0x78   : > { %1586 = vmatpush.bf16.msra.mxu0 %v2481_v44  ;;  %1221 = vmatmul.bf16.gmra.mxu1 %v1157_v63 }
  0x79   : > { %1717 = vmatpush.bf16.msra.mxu1 %v2491_v54  ;;  %1329 = vmatmul.bf16.gmra.mxu2 %v2226_v56 }
  0x7a   : > { %2511 = vmatpush.bf16.msra.mxu2 %v2481_v44  ;;  %1435 = vmatmul.bf16.gmra.mxu3 %v2272_v57 }
  0x7b   : > { %2519 = vmatpush.bf16.msra.mxu3 %v2491_v54 }
  0x7c   : > { %1587 = vmatpush.bf16.msra.mxu0 %v2480_v58 }
  0x7d   : > { %1718 = vmatpush.bf16.msra.mxu1 %v2490_v0 }
  0x7e   : > { %2512 = vmatpush.bf16.msra.mxu2 %v2480_v58 }
  0x7f   : > { %2520 = vmatpush.bf16.msra.mxu3 %v2490_v0 }
  0x80   : > { %1588 = vmatpush.bf16.msra.mxu0 %v2479_v1 }
  0x81   : > { %1719 = vmatpush.bf16.msra.mxu1 %v2489_v6 }
  0x82   : > { %2513 = vmatpush.bf16.msra.mxu2 %v2479_v1 }
  0x83   : > { %2521 = vmatpush.bf16.msra.mxu3 %v2489_v6 }
  0x84   : > { %1589 = vmatpush.bf16.msra.mxu0 %v2478_v7 }
  0x85   : > { %1720 = vmatpush.bf16.msra.mxu1 %v2488_v10 }
  0x86   : > { %2514 = vmatpush.bf16.msra.mxu2 %v2478_v7 }
  0x87   : > { %2522 = vmatpush.bf16.msra.mxu3 %v2488_v10  ;;  %1590 = vmatmul.bf16.vlgmr.msra.gmra.mxu0 %v1530_v17 }
  0x88   : > { %1721 = vmatmul.bf16.vlgmr.msra.gmra.mxu1 %v2348_v18 }
  0x89   : > { %1595 = vmatmul.bf16.vlgmr.msra.gmra.mxu2 %v1531_v30 }
  0x8a   : > { %1726 = vmatmul.bf16.vlgmr.msra.gmra.mxu3 %v2352_v43 }
  0xc4   : > { %v607_v20 = vpop.f32.mrf.mxu0 }
  0xc5   : > { %v686_v21 = vpop.f32.mrf.mxu1 }
  0xc6   : > { %v687_v41 = vadd.f32 %v686_v21, %v607_v20  ;;  %v2618_v21 = vld [vmem:[%s3194_s6] ss:$0 sm:$0xff] }
  0xcc   : > { %v845_v22 = vpop.f32.mrf.mxu2  ;;  %v609_v25 = vpop.f32.mrf.mxu0 }
  0xcd   : > { %v951_v24 = vpop.f32.mrf.mxu3  ;;  %v688_v26 = vpop.f32.mrf.mxu1  ;;  %v855_v46 = vadd.f32 %v845_v22, %v687_v41 }
  0xce   : > { %v689_v50 = vadd.f32 %v688_v26, %v609_v25 }
  0xcf   : > { %v961_v49 = vadd.f32 %v951_v24, %v855_v46 }
  0xd4   : > { %v847_v27 = vpop.f32.mrf.mxu2  ;;  %v612_v29 = vpop.f32.mrf.mxu0 }
  0xd5   : > { %v953_v28 = vpop.f32.mrf.mxu3  ;;  %v691_v31 = vpop.f32.mrf.mxu1  ;;  %v856_v51 = vadd.f32 %v847_v27, %v689_v50 }
  0xd6   : > { %v692_v48 = vadd.f32 %v691_v31, %v612_v29 }
  0xd7   : > { %v962_v58 = vadd.f32 %v953_v28, %v856_v51 }
  0xdc   : > { %v850_v32 = vpop.f32.mrf.mxu2  ;;  %v614_v34 = vpop.f32.mrf.mxu0 }
  0xdd   : > { %v956_v33 = vpop.f32.mrf.mxu3  ;;  %v693_v35 = vpop.f32.mrf.mxu1  ;;  %v857_v55 = vadd.f32 %v850_v32, %v692_v48 }
  0xde   : > { %v694_v61 = vadd.f32 %v693_v35, %v614_v34 }
  0xdf   : > { %v963_v60 = vadd.f32 %v956_v33, %v857_v55 }
  0xe4   : > { %v852_v36 = vpop.f32.mrf.mxu2  ;;  %v1057_v19 = vpop.f32.mrf.mxu0 }
  0xe5   : > { %v958_v37 = vpop.f32.mrf.mxu3  ;;  %v1217_v23 = vpop.f32.mrf.mxu1  ;;  %v1067_v52 = vadd.f32 %v1057_v19, %v961_v49  ;;  %v858_v0 = vadd.f32 %v852_v36, %v694_v61 }
  0xe7   : > { %v1227_v59 = vadd.f32 %v1217_v23, %v1067_v52  ;;  %v964_v9 = vadd.f32 %v958_v37, %v858_v0 }
  0xec   : > { %v1325_v30 = vpop.f32.mrf.mxu2  ;;  %v1059_v39 = vpop.f32.mrf.mxu0 }
  0xed   : > { %v1431_v38 = vpop.f32.mrf.mxu3  ;;  %v1219_v40 = vpop.f32.mrf.mxu1  ;;  %v1335_v62 = vadd.f32 %v1325_v30, %v1227_v59  ;;  %v1068_v63 = vadd.f32 %v1059_v39, %v962_v58 }
  0xef   : > { %v1441_v6 = vadd.f32 %v1431_v38, %v1335_v62  ;;  %v1228_v7 = vadd.f32 %v1219_v40, %v1068_v63 }
  0xf4   : > { %v1327_v42 = vpop.f32.mrf.mxu2  ;;  %v1062_v45 = vpop.f32.mrf.mxu0 }
  0xf5   : > { %v1433_v44 = vpop.f32.mrf.mxu3  ;;  %v1222_v47 = vpop.f32.mrf.mxu1  ;;  %v1069_v1 = vadd.f32 %v1062_v45, %v963_v60  ;;  %v1336_v12 = vadd.f32 %v1327_v42, %v1228_v7 }
  0xf7   : > { %v1229_v10 = vadd.f32 %v1222_v47, %v1069_v1  ;;  %v1442_v18 = vadd.f32 %v1433_v44, %v1336_v12 }
  0xfc   : > { %v1330_v53 = vpop.f32.mrf.mxu2  ;;  %v1064_v56 = vpop.f32.mrf.mxu0 }
  0xfd   : > { %v1436_v54 = vpop.f32.mrf.mxu3  ;;  %v1224_v57 = vpop.f32.mrf.mxu1  ;;  %v1337_v16 = vadd.f32 %v1330_v53, %v1229_v10  ;;  %v1070_v17 = vadd.f32 %v1064_v56, %v964_v9 }
  0xff   : > { %v1443_v25 = vadd.f32 %v1436_v54, %v1337_v16  ;;  %v1230_v26 = vadd.f32 %v1224_v57, %v1070_v17 }
 0x104   : > { %v1332_v2 = vpop.f32.mrf.mxu2  ;;  %v1591_v5 = vpop.f32.mrf.mxu0 }
 0x105   : > { %v1438_v3 = vpop.f32.mrf.mxu3  ;;  %v1722_v11 = vpop.f32.mrf.mxu1  ;;  %v1601_v13 = vadd.f32 %v1591_v5, %v1441_v6  ;;  %v1338_v31 = vadd.f32 %v1332_v2, %v1230_v26 }
 0x106   : > { %v1736_v15 = vmul.f32 %v2619_v4, %v1722_v11 }
 0x107   : > { %v1609_v20 = vmul.f32 %v2617_v14, %v1601_v13  ;;  %v1444_v30 = vadd.f32 %v1438_v3, %v1338_v31 }
 0x108   : > { %v1744_v43 = vadd.f32 %v2620_v8, %v1736_v15 }
 0x109   : > { %v1617_v35 = vadd.f32 %v2618_v21, %v1609_v20 }
 0x10a   : > { %1748 = vst [vmem:[%s3112_s20] sm:$0xff] %v1744_v43 }
 0x10b   : > { %v1621_v39 = vmax.f32 %v1617_v35, 0.0 }
 0x10c   : > { %v1596_v22 = vpop.f32.mrf.mxu2  ;;  %v1593_v28 = vpop.f32.mrf.mxu0 }
 0x10d   : > { %v1727_v24 = vpop.f32.mrf.mxu3  ;;  %v1602_v29 = vadd.f32 %v1593_v28, %v1442_v18  ;;  %v1603_v32 = vadd.f32 %v1596_v22, %v1443_v25  ;;  %v1724_v34 = vpop.f32.mrf.mxu1 }
 0x10e   : > { %v1738_v27 = vmul.f32 %v2619_v4, %v1727_v24  ;;  %v1737_v37 = vmul.f32 %v2619_v4, %v1724_v34 }
 0x10f   : > { %v1610_v36 = vmul.f32 %v2617_v14, %v1602_v29  ;;  %v1611_v38 = vmul.f32 %v2617_v14, %v1603_v32 }
 0x110   : > { %v1746_v33 = vadd.f32 %v2620_v8, %v1738_v27  ;;  %v1745_v23 = vadd.f32 %v2620_v8, %v1737_v37 }
 0x111   : > { %v1618_v19 = vadd.f32 %v2618_v21, %v1610_v36  ;;  %v1619_v47 = vadd.f32 %v2618_v21, %v1611_v38 }
 0x112   : > { %1750 = vst [vmem:[%s3112_s20 + $0x10] sm:$0xff] %v1746_v33 }
 0x113   : > { %v1622_v40 = vmax.f32 %v1618_v19, 0.0  ;;  %1749 = vst [vmem:[%s3112_s20 + $0x8] sm:$0xff] %v1745_v23 }
 0x114   : > { %v1598_v41 = vpop.f32.mrf.mxu2 }
 0x115   : > { %v1729_v42 = vpop.f32.mrf.mxu3  ;;  %v1604_v44 = vadd.f32 %v1598_v41, %v1444_v30  ;;  %v2499_v46 = vpack.c.bf16 %v1622_v40, %v1621_v39 }
 0x116   : > { %v1739_v45 = vmul.f32 %v2619_v4, %v1729_v42 }
 0x117   : > { %v1612_v48 = vmul.f32 %v2617_v14, %v1604_v44  ;;  %2500 = vst [vmem:[%s461_s29] sm:$0xff] %v2499_v46  }
 0x118   : > { %v1747_v49 = vadd.f32 %v2620_v8, %v1739_v45 }
 0x119   : > { %v1620_v50 = vadd.f32 %v2618_v21, %v1612_v48 }
 0x11a   : > { %1751 = vst [vmem:[%s3112_s20 + $0x18] sm:$0xff] %v1747_v49 }
 0x11b   : > { %2678 = shalt.err (!%p2675_p10)
}
 0x11c   : > { %s2786_s20 = smov 128   ;;  %s2787_s25 = smov 8   ;;  %v1623_v51 = vmax.f32 %v1619_v47, 0.0  ;;  %v1624_v52 = vmax.f32 %v1620_v50, 0.0 }
 0x11d   : > { %2529 = dma.vmem_to_hbm [thread:$0]  (%p2902_p3), %s3124_s14, 512, %s3131_s26, %s1758_s0, %s2786_s20, %s2786_s20, %s2787_s25  }
 0x11e   : > { %v2504_v53 = vpack.c.bf16 %v1624_v52, %v1623_v51  ;;  %s1753_s1 = scalar_lea.sflag [#allocation4], %s3093_s27  ;;  %s2693_s2 = sshra.s32 %s1775_s15, 4  ;;  %s2694_s2 = int_to_ptr.hbm [resolvable:$true] %s2693_s2 }
 0x11f   : > { %s2695_s3 = scalar_lea.hbm %s2694_s2, 16  ;;  %s2699_s30 = scalar_lea.hbm %s3198_s10, 64 }
 0x120   : > { %2506 = vst [vmem:[%s461_s29 + $0x8] sm:$0xff] %v2504_v53   ;;  %p2696_p11 = scmp.ne.s32.totalorder %s2694_s2, %s2695_s3  ;;  %p2700_p0 = scmp.lt.s32.totalorder %s2694_s2, %s3198_s10 }
 0x121   : > { %p2701_p1 = scmp.lt.s32.totalorder %s2699_s30, %s2695_s3 }
 0x122   : > { %p2697_p12 = pnand %p2696_p11, %p2902_p3 }
 0x123   : > { %p2702_p2 = por %p2701_p1, %p2700_p0 }
 0x124   : > { %p2698_p13 = pneg %p2697_p12 }
 0x126   : > { %p2703_p4 = pnand %p2702_p2, %p2698_p13 }
 0x128   : > { %2706 = shalt.err (!%p2703_p4)
}
 0x129   : > { %s2788_s27 = smov 64   ;;  %s2789_s14 = smov 4  }
 0x12a   : > { %2528 = dma.vmem_to_hbm [thread:$0]  (%p2902_p3), %s1773_s16, 256, %s1775_s15, %s1753_s1, %s2788_s27, %s2788_s27, %s2789_s14  }
 0x12b PF: > { %s3224_s26 = sld [smem:[#allocation11_spill]]  ;;  %p2545_p5 = scmp.ge.s32.totalorder %s2781_s24, 2 }
 0x12d   : > { %p2537_p6 = pnand %p2545_p5, %p2911_p8 }
 0x12f   : > { %p2538_p7 = pneg %p2537_p6 }
 0x131   : > { %s1808_s21 = sand.u32 1, %s3224_s26  }
 0x132   : > { %s1809_s20 = scalar_lea.sflag [#allocation4], %s1808_s21 }
 0x133   : > { %2744 = dma.done.wait (%p2538_p7), %s1809_s20, 256  }
 0x134   : > { %2746 = vsyncadd (%p2538_p7), %s1809_s20, 4294967040  ;;  %s1819_s25 = scalar_lea.sflag [#allocation7], %s1808_s21 }
 0x135   : > { %2748 = dma.done.wait (%p2538_p7), %s1819_s25, 512  }
 0x136   : > { %2750 = vsyncadd (%p2538_p7), %s1819_s25, 4294966784  ;;  %s29_s24 = sadd.s32 1, %s2781_s24   ;;  %s3226_s12 = smov %s2932_s17 }
 0x137   : > { %p26_p9 = scmp.ge.s32.totalorder %s29_s24, 6   ;;  %s3227_s20 = sld [smem:[#allocation12_spill]] }
 0x138   : > { %s3228_s22 = sld [smem:[#allocation13_spill]]  ;;  %s3229_s17 = smov %s2757_s18 }
 0x139   : > { %s3230_s18 = smov %s2761_s19  ;;  %s3231_s19 = smov %s3226_s12 }
 0x13a   : > { %s3232_s21 = smov %s2777_s23  ;;  %s3233_s23 = smov %s3239_s28 }
 0x13b   :  { %28 = sbr.rel (!%p26_p9) target bundleno = 14 (0xe), region = 140 }
 0x140   :  { %1825 = vsyncpa [#allocation3], 1 }
 0x141   :  { %1827 = vsyncpa [#allocation3 + $0x1], 1 }
 0x142   :  { %1828 = vsyncpa [#allocation4], 1 }
 0x143   :  { %1830 = vsyncpa [#allocation4 + $0x1], 1 }
 0x144   :  { %1831 = vsyncpa [#allocation7], 1 }
 0x145   :  { %1833 = vsyncpa [#allocation7 + $0x1], 1 }

</bundles_post_ra>
